<compile_context>
chip_gen: v5e
topology: v5e:2x2
jax: 0.10.0
libtpu: 0.0.40
codegen_flags: <defaults>
</compile_context>

<pallas_src>
import functools

import jax
import jax.numpy as jnp
import numpy as np
from jax import lax
from jax.experimental import pallas as pl
from jax.experimental.pallas import tpu as pltpu

ALPHA = 0.1        # LeakyReLU negative slope used by GraphAttentionLayer
NEG_BIG = -9e15    # mask fill value used by pyGAT


def _elu(x):
    # Clamp the discarded branch so exp() never overflows (forward-safe anyway).
    return jnp.where(x > 0, x, jnp.exp(jnp.minimum(x, 0.0)) - 1.0)


def _attention(Wh, a1_row, a2_row, adj_mask):
    """softmax(mask(leakyrelu(Wh@a1 + (Wh@a2)^T))) @ Wh  — entirely on-chip.

    Wh: (M, F), a1_row/a2_row: (1, F), adj_mask: (M, M) bool.
    """
    # a1 projection on the VPU/XLU: a 1-lane-wide MXU result would waste the
    # systolic array and serialize behind the real matmuls.
    Wh1 = jnp.sum(Wh * a1_row, axis=-1, keepdims=True)                  # (M, 1)
    # a2 projection: thin dot_general produces the row vector lane-major
    # directly, avoiding an (M,1)->(1,M) relayout through the XLU.
    Wh2t = lax.dot_general(a2_row, Wh, (((1,), (1,)), ((), ())),
                           preferred_element_type=jnp.float32)          # (1, M)
    e = Wh1 + Wh2t                                                      # (M, M)
    e = jnp.where(e > 0, e, ALPHA * e)                                  # LeakyReLU
    att = jnp.where(adj_mask, e, jnp.float32(NEG_BIG))                  # mask
    att = jnp.exp(att - jnp.max(att, axis=1, keepdims=True))            # softmax(dim=1)
    inv = pl.reciprocal(jnp.sum(att, axis=1, keepdims=True), approx=False)
    att = att * inv
    return jnp.dot(att, Wh, preferred_element_type=jnp.float32)         # (M, F)


def gat_fused_kernel(x_ref, adj_ref, wflat_ref, a1h_ref, a2h_ref,
                     wo_ref, a1o_ref, a2o_ref, out_ref, *, nhead, nhid):
    adj_mask = adj_ref[...] > 0                                         # bf16 0/1 -> bool

    # ---- layer 1: all attention heads --------------------------------------
    # One batched projection for every head: (N, nfeat) @ (nfeat, nhead*nhid).
    Wh_all = jnp.dot(x_ref[...], wflat_ref[...],
                     preferred_element_type=jnp.float32)                # (N, nhead*nhid)
    heads = []
    for h in range(nhead):                                              # static unroll
        Wh = Wh_all[:, h * nhid:(h + 1) * nhid]                         # (N, nhid)
        heads.append(_elu(_attention(Wh, a1h_ref[h], a2h_ref[h], adj_mask)))
    # torch.cat([...], dim=1) fused on-chip: hcat never touches HBM.
    hcat = jnp.concatenate(heads, axis=1)                               # (N, nhead*nhid)

    # ---- layer 2: out_att (concat=False) + ELU + log_softmax(dim=1) --------
    Wh_o = jnp.dot(hcat, wo_ref[...], preferred_element_type=jnp.float32)  # (N, nclass)
    h2 = _elu(_attention(Wh_o, a1o_ref[...], a2o_ref[...], adj_mask))
    z = h2 - jnp.max(h2, axis=1, keepdims=True)
    out_ref[...] = z - jnp.log(jnp.sum(jnp.exp(z), axis=1, keepdims=True))


def gat_forward(x, adj, params):
    W_h, a1_h, a2_h, W_o, a1_o, a2_o = params
    nhead, nfeat, nhid = W_h.shape
    N = x.shape[0]
    nclass = W_o.shape[1]

    # One-off host-side parameter repacking.
    # W_flat[:, h*nhid:(h+1)*nhid] == W_h[h]  -> single batched projection.
    W_flat = jnp.transpose(W_h, (1, 0, 2)).reshape(nfeat, nhead * nhid)
    A1h = jnp.transpose(a1_h, (0, 2, 1))        # (nhead, 1, nhid)
    A2h = a2_h                                  # (nhead, 1, nhid)
    a1o = a1_o.T                                # (1, nclass)
    a2o = a2_o                                  # (1, nclass)
    # adj is a 0/1 mask: bf16 is exact and halves its DMA / VMEM footprint.
    adj_bf16 = adj.astype(jnp.bfloat16)

    kernel = functools.partial(gat_fused_kernel, nhead=nhead, nhid=nhid)
    vmem_spec = pl.BlockSpec(memory_space=pltpu.MemorySpace.VMEM)

    return pl.pallas_call(
        kernel,
        out_shape=jax.ShapeDtypeStruct((N, nclass), jnp.float32),
        in_specs=[vmem_spec] * 8,
        out_specs=vmem_spec,
        compiler_params=pltpu.CompilerParams(
            vmem_limit_bytes=32 * 1024 * 1024),
    )(x, adj_bf16, W_flat, A1h, A2h, W_o, a1o, a2o)


def gat_reference(x, adj, params):
    """Pure-JAX reference (mirrors the PyTorch forward) for correctness check."""
    W_h, a1_h, a2_h, W_o, a1_o, a2_o = params
    nhead = W_h.shape[0]

    def layer(x_in, W, a1, a2):
        Wh = x_in @ W
        e = Wh @ a1 + (Wh @ a2.T).T
        e = jnp.where(e > 0, e, ALPHA * e)
        att = jnp.where(adj > 0, e, NEG_BIG)
        att = jax.nn.softmax(att, axis=1)
        return att @ Wh

    outs = [jax.nn.elu(layer(x, W_h[h], a1_h[h], a2_h[h])) for h in range(nhead)]
    hcat = jnp.concatenate(outs, axis=1)
    h = jax.nn.elu(layer(hcat, W_o, a1_o, a2_o))
    return jax.nn.log_softmax(h, axis=1)


def init_params(key, nfeat, nhid, nclass, nhead):
    """Deterministic xavier-uniform-like init (gain=1.414, as in pyGAT)."""
    gain = 1.414
    ks = jax.random.split(key, 4)

    def xavier(k, shape, fan_in, fan_out):
        bound = gain * jnp.sqrt(6.0 / (fan_in + fan_out))
        return jax.random.uniform(k, shape, jnp.float32, -bound, bound)

    W_h = xavier(ks[0], (nhead, nfeat, nhid), nfeat, nhid)
    a_h = xavier(ks[1], (nhead, 2 * nhid, 1), 2 * nhid, 1)
    a1_h = a_h[:, :nhid, :]                                   # (nhead, nhid, 1)
    a2_h = jnp.transpose(a_h[:, nhid:, :], (0, 2, 1))         # (nhead, 1, nhid)
    W_o = xavier(ks[2], (nhid * nhead, nclass), nhid * nhead, nclass)
    a_o = xavier(ks[3], (2 * nclass, 1), 2 * nclass, 1)
    a1_o = a_o[:nclass, :]                                    # (nclass, 1)
    a2_o = a_o[nclass:, :].T                                  # (1, nclass)
    return (W_h, a1_h, a2_h, W_o, a1_o, a2_o)


if __name__ == "__main__":
    N, nfeat, nhid, nclass, nhead = 64, 16, 16, 8, 2

    key = jax.random.PRNGKey(0)
    kx, kadj, kp = jax.random.split(key, 3)

    x = jax.random.normal(kx, (N, nfeat), jnp.float32)
    adj = (jax.random.uniform(kadj, (N, N)) < 0.3).astype(jnp.float32)
    adj = jnp.maximum(adj, jnp.eye(N, dtype=jnp.float32))     # self-loops

    params = init_params(kp, nfeat, nhid, nclass, nhead)

    out = gat_forward(x, adj, params)
    out = jax.block_until_ready(out)

    ref = jax.block_until_ready(gat_reference(x, adj, params))
    assert out.shape == (N, nclass)
    assert np.allclose(np.asarray(out), np.asarray(ref), atol=1e-4, rtol=1e-4)

    print("KERNEL_OK")
</pallas_src>

<mosaic_0001>
module attributes {stable_mosaic.version = 11 : i64} {
  func.func @gat_fused_kernel(%arg0: memref<64x16xf32, #tpu.memory_space<vmem>>, %arg1: memref<64x64xbf16, #tpu.memory_space<vmem>>, %arg2: memref<16x32xf32, #tpu.memory_space<vmem>>, %arg3: memref<2x1x16xf32, #tpu.memory_space<vmem>>, %arg4: memref<2x1x16xf32, #tpu.memory_space<vmem>>, %arg5: memref<32x8xf32, #tpu.memory_space<vmem>>, %arg6: memref<1x8xf32, #tpu.memory_space<vmem>>, %arg7: memref<1x8xf32, #tpu.memory_space<vmem>>, %arg8: memref<64x8xf32, #tpu.memory_space<vmem>>) attributes {dimension_semantics = [], scalar_prefetch = 0 : i64, scratch_operands = 0 : i64, tpu.core_type = #tpu.core_type<tc>} {
    %c0 = arith.constant 0 : index
    %c0_0 = arith.constant 0 : index
    %0 = vector.load %arg1[%c0, %c0_0] : memref<64x64xbf16, #tpu.memory_space<vmem>>, vector<64x64xbf16>
    %cst = arith.constant 0.000000e+00 : bf16
    %1 = vector.broadcast %cst : bf16 to vector<64x64xbf16>
    %2 = arith.cmpf ogt, %0, %1 : vector<64x64xbf16>
    %c0_1 = arith.constant 0 : index
    %c0_2 = arith.constant 0 : index
    %3 = vector.load %arg0[%c0_1, %c0_2] : memref<64x16xf32, #tpu.memory_space<vmem>>, vector<64x16xf32>
    %c0_3 = arith.constant 0 : index
    %c0_4 = arith.constant 0 : index
    %4 = vector.load %arg2[%c0_3, %c0_4] : memref<16x32xf32, #tpu.memory_space<vmem>>, vector<16x32xf32>
    %cst_5 = arith.constant dense<0.000000e+00> : vector<64x32xf32>
    %5 = tpu.matmul %3, %4, %cst_5 {dimension_numbers = #tpu.dot_dimension_numbers<[1], [0], [0], [1], [0, 0, 1, 1], [], []>} : vector<64x16xf32>, vector<16x32xf32>, vector<64x32xf32> -> vector<64x32xf32>
    %6 = vector.extract_strided_slice %5 {offsets = [0, 0], sizes = [64, 16], strides = [1, 1]} : vector<64x32xf32> to vector<64x16xf32>
    %c0_6 = arith.constant 0 : index
    %c0_7 = arith.constant 0 : index
    %c0_8 = arith.constant 0 : index
    %7 = vector.load %arg3[%c0_6, %c0_7, %c0_8] : memref<2x1x16xf32, #tpu.memory_space<vmem>>, vector<1x1x16xf32>
    %8 = vector.shape_cast %7 : vector<1x1x16xf32> to vector<1x16xf32>
    %c0_9 = arith.constant 0 : index
    %c0_10 = arith.constant 0 : index
    %c0_11 = arith.constant 0 : index
    %9 = vector.load %arg4[%c0_9, %c0_10, %c0_11] : memref<2x1x16xf32, #tpu.memory_space<vmem>>, vector<1x1x16xf32>
    %10 = vector.shape_cast %9 : vector<1x1x16xf32> to vector<1x16xf32>
    %11 = vector.broadcast %8 : vector<1x16xf32> to vector<64x16xf32>
    %12 = arith.mulf %6, %11 : vector<64x16xf32>
    %cst_12 = arith.constant dense<0.000000e+00> : vector<64xf32>
    %13 = vector.multi_reduction <add>, %12, %cst_12 [1] : vector<64x16xf32> to vector<64xf32>
    %14 = vector.shape_cast %13 : vector<64xf32> to vector<64x1xf32>
    %cst_13 = arith.constant dense<0.000000e+00> : vector<1x64xf32>
    %15 = tpu.matmul %10, %6, %cst_13 {dimension_numbers = #tpu.dot_dimension_numbers<[1], [1], [0], [0], [0, 0, 1, 0], [], []>} : vector<1x16xf32>, vector<64x16xf32>, vector<1x64xf32> -> vector<1x64xf32>
    %16 = vector.broadcast %14 : vector<64x1xf32> to vector<64x64xf32>
    %17 = vector.broadcast %15 : vector<1x64xf32> to vector<64x64xf32>
    %18 = arith.addf %16, %17 : vector<64x64xf32>
    %cst_14 = arith.constant 0.000000e+00 : f32
    %19 = vector.broadcast %cst_14 : f32 to vector<64x64xf32>
    %20 = arith.cmpf ogt, %18, %19 : vector<64x64xf32>
    %cst_15 = arith.constant 1.000000e-01 : f32
    %21 = vector.broadcast %cst_15 : f32 to vector<64x64xf32>
    %22 = arith.mulf %21, %18 : vector<64x64xf32>
    %23 = arith.select %20, %18, %22 : vector<64x64xi1>, vector<64x64xf32>
    %cst_16 = arith.constant -9.000000e+15 : f32
    %24 = vector.broadcast %cst_16 : f32 to vector<64x64xf32>
    %25 = arith.select %2, %23, %24 : vector<64x64xi1>, vector<64x64xf32>
    %cst_17 = arith.constant dense<0xFF800000> : vector<64xf32>
    %26 = vector.multi_reduction <maximumf>, %25, %cst_17 [1] : vector<64x64xf32> to vector<64xf32>
    %27 = vector.shape_cast %26 : vector<64xf32> to vector<64x1xf32>
    %28 = vector.broadcast %27 : vector<64x1xf32> to vector<64x64xf32>
    %29 = arith.subf %25, %28 : vector<64x64xf32>
    %30 = math.exp %29 : vector<64x64xf32>
    %cst_18 = arith.constant dense<0.000000e+00> : vector<64xf32>
    %31 = vector.multi_reduction <add>, %30, %cst_18 [1] : vector<64x64xf32> to vector<64xf32>
    %32 = vector.shape_cast %31 : vector<64xf32> to vector<64x1xf32>
    %33 = tpu.reciprocal %32 : vector<64x1xf32> -> vector<64x1xf32>
    %34 = vector.broadcast %33 : vector<64x1xf32> to vector<64x64xf32>
    %35 = arith.mulf %30, %34 : vector<64x64xf32>
    %cst_19 = arith.constant dense<0.000000e+00> : vector<64x16xf32>
    %36 = tpu.matmul %35, %6, %cst_19 {dimension_numbers = #tpu.dot_dimension_numbers<[1], [0], [0], [1], [0, 0, 1, 1], [], []>} : vector<64x64xf32>, vector<64x16xf32>, vector<64x16xf32> -> vector<64x16xf32>
    %cst_20 = arith.constant 0.000000e+00 : f32
    %37 = vector.broadcast %cst_20 : f32 to vector<64x16xf32>
    %38 = arith.cmpf ogt, %36, %37 : vector<64x16xf32>
    %cst_21 = arith.constant 0.000000e+00 : f32
    %39 = vector.broadcast %cst_21 : f32 to vector<64x16xf32>
    %40 = arith.minimumf %36, %39 : vector<64x16xf32>
    %41 = math.exp %40 : vector<64x16xf32>
    %cst_22 = arith.constant 1.000000e+00 : f32
    %42 = vector.broadcast %cst_22 : f32 to vector<64x16xf32>
    %43 = arith.subf %41, %42 : vector<64x16xf32>
    %44 = arith.select %38, %36, %43 : vector<64x16xi1>, vector<64x16xf32>
    %45 = vector.extract_strided_slice %5 {offsets = [0, 16], sizes = [64, 16], strides = [1, 1]} : vector<64x32xf32> to vector<64x16xf32>
    %c1 = arith.constant 1 : index
    %c0_23 = arith.constant 0 : index
    %c0_24 = arith.constant 0 : index
    %46 = vector.load %arg3[%c1, %c0_23, %c0_24] : memref<2x1x16xf32, #tpu.memory_space<vmem>>, vector<1x1x16xf32>
    %47 = vector.shape_cast %46 : vector<1x1x16xf32> to vector<1x16xf32>
    %c1_25 = arith.constant 1 : index
    %c0_26 = arith.constant 0 : index
    %c0_27 = arith.constant 0 : index
    %48 = vector.load %arg4[%c1_25, %c0_26, %c0_27] : memref<2x1x16xf32, #tpu.memory_space<vmem>>, vector<1x1x16xf32>
    %49 = vector.shape_cast %48 : vector<1x1x16xf32> to vector<1x16xf32>
    %50 = vector.broadcast %47 : vector<1x16xf32> to vector<64x16xf32>
    %51 = arith.mulf %45, %50 : vector<64x16xf32>
    %cst_28 = arith.constant dense<0.000000e+00> : vector<64xf32>
    %52 = vector.multi_reduction <add>, %51, %cst_28 [1] : vector<64x16xf32> to vector<64xf32>
    %53 = vector.shape_cast %52 : vector<64xf32> to vector<64x1xf32>
    %cst_29 = arith.constant dense<0.000000e+00> : vector<1x64xf32>
    %54 = tpu.matmul %49, %45, %cst_29 {dimension_numbers = #tpu.dot_dimension_numbers<[1], [1], [0], [0], [0, 0, 1, 0], [], []>} : vector<1x16xf32>, vector<64x16xf32>, vector<1x64xf32> -> vector<1x64xf32>
    %55 = vector.broadcast %53 : vector<64x1xf32> to vector<64x64xf32>
    %56 = vector.broadcast %54 : vector<1x64xf32> to vector<64x64xf32>
    %57 = arith.addf %55, %56 : vector<64x64xf32>
    %cst_30 = arith.constant 0.000000e+00 : f32
    %58 = vector.broadcast %cst_30 : f32 to vector<64x64xf32>
    %59 = arith.cmpf ogt, %57, %58 : vector<64x64xf32>
    %cst_31 = arith.constant 1.000000e-01 : f32
    %60 = vector.broadcast %cst_31 : f32 to vector<64x64xf32>
    %61 = arith.mulf %60, %57 : vector<64x64xf32>
    %62 = arith.select %59, %57, %61 : vector<64x64xi1>, vector<64x64xf32>
    %cst_32 = arith.constant -9.000000e+15 : f32
    %63 = vector.broadcast %cst_32 : f32 to vector<64x64xf32>
    %64 = arith.select %2, %62, %63 : vector<64x64xi1>, vector<64x64xf32>
    %cst_33 = arith.constant dense<0xFF800000> : vector<64xf32>
    %65 = vector.multi_reduction <maximumf>, %64, %cst_33 [1] : vector<64x64xf32> to vector<64xf32>
    %66 = vector.shape_cast %65 : vector<64xf32> to vector<64x1xf32>
    %67 = vector.broadcast %66 : vector<64x1xf32> to vector<64x64xf32>
    %68 = arith.subf %64, %67 : vector<64x64xf32>
    %69 = math.exp %68 : vector<64x64xf32>
    %cst_34 = arith.constant dense<0.000000e+00> : vector<64xf32>
    %70 = vector.multi_reduction <add>, %69, %cst_34 [1] : vector<64x64xf32> to vector<64xf32>
    %71 = vector.shape_cast %70 : vector<64xf32> to vector<64x1xf32>
    %72 = tpu.reciprocal %71 : vector<64x1xf32> -> vector<64x1xf32>
    %73 = vector.broadcast %72 : vector<64x1xf32> to vector<64x64xf32>
    %74 = arith.mulf %69, %73 : vector<64x64xf32>
    %cst_35 = arith.constant dense<0.000000e+00> : vector<64x16xf32>
    %75 = tpu.matmul %74, %45, %cst_35 {dimension_numbers = #tpu.dot_dimension_numbers<[1], [0], [0], [1], [0, 0, 1, 1], [], []>} : vector<64x64xf32>, vector<64x16xf32>, vector<64x16xf32> -> vector<64x16xf32>
    %cst_36 = arith.constant 0.000000e+00 : f32
    %76 = vector.broadcast %cst_36 : f32 to vector<64x16xf32>
    %77 = arith.cmpf ogt, %75, %76 : vector<64x16xf32>
    %cst_37 = arith.constant 0.000000e+00 : f32
    %78 = vector.broadcast %cst_37 : f32 to vector<64x16xf32>
    %79 = arith.minimumf %75, %78 : vector<64x16xf32>
    %80 = math.exp %79 : vector<64x16xf32>
    %cst_38 = arith.constant 1.000000e+00 : f32
    %81 = vector.broadcast %cst_38 : f32 to vector<64x16xf32>
    %82 = arith.subf %80, %81 : vector<64x16xf32>
    %83 = arith.select %77, %75, %82 : vector<64x16xi1>, vector<64x16xf32>
    %84 = tpu.concatenate %44, %83 in 1 : vector<64x16xf32>, vector<64x16xf32> -> vector<64x32xf32>
    %c0_39 = arith.constant 0 : index
    %c0_40 = arith.constant 0 : index
    %85 = vector.load %arg5[%c0_39, %c0_40] : memref<32x8xf32, #tpu.memory_space<vmem>>, vector<32x8xf32>
    %cst_41 = arith.constant dense<0.000000e+00> : vector<64x8xf32>
    %86 = tpu.matmul %84, %85, %cst_41 {dimension_numbers = #tpu.dot_dimension_numbers<[1], [0], [0], [1], [0, 0, 1, 1], [], []>} : vector<64x32xf32>, vector<32x8xf32>, vector<64x8xf32> -> vector<64x8xf32>
    %c0_42 = arith.constant 0 : index
    %c0_43 = arith.constant 0 : index
    %87 = vector.load %arg6[%c0_42, %c0_43] : memref<1x8xf32, #tpu.memory_space<vmem>>, vector<1x8xf32>
    %c0_44 = arith.constant 0 : index
    %c0_45 = arith.constant 0 : index
    %88 = vector.load %arg7[%c0_44, %c0_45] : memref<1x8xf32, #tpu.memory_space<vmem>>, vector<1x8xf32>
    %89 = vector.broadcast %87 : vector<1x8xf32> to vector<64x8xf32>
    %90 = arith.mulf %86, %89 : vector<64x8xf32>
    %cst_46 = arith.constant dense<0.000000e+00> : vector<64xf32>
    %91 = vector.multi_reduction <add>, %90, %cst_46 [1] : vector<64x8xf32> to vector<64xf32>
    %92 = vector.shape_cast %91 : vector<64xf32> to vector<64x1xf32>
    %cst_47 = arith.constant dense<0.000000e+00> : vector<1x64xf32>
    %93 = tpu.matmul %88, %86, %cst_47 {dimension_numbers = #tpu.dot_dimension_numbers<[1], [1], [0], [0], [0, 0, 1, 0], [], []>} : vector<1x8xf32>, vector<64x8xf32>, vector<1x64xf32> -> vector<1x64xf32>
    %94 = vector.broadcast %92 : vector<64x1xf32> to vector<64x64xf32>
    %95 = vector.broadcast %93 : vector<1x64xf32> to vector<64x64xf32>
    %96 = arith.addf %94, %95 : vector<64x64xf32>
    %cst_48 = arith.constant 0.000000e+00 : f32
    %97 = vector.broadcast %cst_48 : f32 to vector<64x64xf32>
    %98 = arith.cmpf ogt, %96, %97 : vector<64x64xf32>
    %cst_49 = arith.constant 1.000000e-01 : f32
    %99 = vector.broadcast %cst_49 : f32 to vector<64x64xf32>
    %100 = arith.mulf %99, %96 : vector<64x64xf32>
    %101 = arith.select %98, %96, %100 : vector<64x64xi1>, vector<64x64xf32>
    %cst_50 = arith.constant -9.000000e+15 : f32
    %102 = vector.broadcast %cst_50 : f32 to vector<64x64xf32>
    %103 = arith.select %2, %101, %102 : vector<64x64xi1>, vector<64x64xf32>
    %cst_51 = arith.constant dense<0xFF800000> : vector<64xf32>
    %104 = vector.multi_reduction <maximumf>, %103, %cst_51 [1] : vector<64x64xf32> to vector<64xf32>
    %105 = vector.shape_cast %104 : vector<64xf32> to vector<64x1xf32>
    %106 = vector.broadcast %105 : vector<64x1xf32> to vector<64x64xf32>
    %107 = arith.subf %103, %106 : vector<64x64xf32>
    %108 = math.exp %107 : vector<64x64xf32>
    %cst_52 = arith.constant dense<0.000000e+00> : vector<64xf32>
    %109 = vector.multi_reduction <add>, %108, %cst_52 [1] : vector<64x64xf32> to vector<64xf32>
    %110 = vector.shape_cast %109 : vector<64xf32> to vector<64x1xf32>
    %111 = tpu.reciprocal %110 : vector<64x1xf32> -> vector<64x1xf32>
    %112 = vector.broadcast %111 : vector<64x1xf32> to vector<64x64xf32>
    %113 = arith.mulf %108, %112 : vector<64x64xf32>
    %cst_53 = arith.constant dense<0.000000e+00> : vector<64x8xf32>
    %114 = tpu.matmul %113, %86, %cst_53 {dimension_numbers = #tpu.dot_dimension_numbers<[1], [0], [0], [1], [0, 0, 1, 1], [], []>} : vector<64x64xf32>, vector<64x8xf32>, vector<64x8xf32> -> vector<64x8xf32>
    %cst_54 = arith.constant 0.000000e+00 : f32
    %115 = vector.broadcast %cst_54 : f32 to vector<64x8xf32>
    %116 = arith.cmpf ogt, %114, %115 : vector<64x8xf32>
    %cst_55 = arith.constant 0.000000e+00 : f32
    %117 = vector.broadcast %cst_55 : f32 to vector<64x8xf32>
    %118 = arith.minimumf %114, %117 : vector<64x8xf32>
    %119 = math.exp %118 : vector<64x8xf32>
    %cst_56 = arith.constant 1.000000e+00 : f32
    %120 = vector.broadcast %cst_56 : f32 to vector<64x8xf32>
    %121 = arith.subf %119, %120 : vector<64x8xf32>
    %122 = arith.select %116, %114, %121 : vector<64x8xi1>, vector<64x8xf32>
    %cst_57 = arith.constant dense<0xFF800000> : vector<64xf32>
    %123 = vector.multi_reduction <maximumf>, %122, %cst_57 [1] : vector<64x8xf32> to vector<64xf32>
    %124 = vector.shape_cast %123 : vector<64xf32> to vector<64x1xf32>
    %125 = vector.broadcast %124 : vector<64x1xf32> to vector<64x8xf32>
    %126 = arith.subf %122, %125 : vector<64x8xf32>
    %127 = math.exp %126 : vector<64x8xf32>
    %cst_58 = arith.constant dense<0.000000e+00> : vector<64xf32>
    %128 = vector.multi_reduction <add>, %127, %cst_58 [1] : vector<64x8xf32> to vector<64xf32>
    %129 = vector.shape_cast %128 : vector<64xf32> to vector<64x1xf32>
    %130 = math.log %129 : vector<64x1xf32>
    %131 = vector.broadcast %130 : vector<64x1xf32> to vector<64x8xf32>
    %132 = arith.subf %126, %131 : vector<64x8xf32>
    %c0_59 = arith.constant 0 : index
    %c0_60 = arith.constant 0 : index
    %133 = vector.load %arg8[%c0_59, %c0_60] : memref<64x8xf32, #tpu.memory_space<vmem>>, vector<64x8xf32>
    tpu.vector_store %arg8[%c0_59, %c0_60], %132 {strides = array<i32>} : memref<64x8xf32, #tpu.memory_space<vmem>>, vector<64x8xf32>,
    return
  }
}

</mosaic_0001>

<bundles_post_ra>
// kernel: tpu_custom_call.1
= control target key start
LH: loop header
LB: loop body
LE: loop exit
PB: predicated region body
PF: predicated region fallthrough
CT: control target
= control target key end

     0   :  { %vm2898_vm0 = vcmask 130048   ;;  %s1992_s24 = smov 112   ;;  %s1993_s26 = smov 16   ;;  %vm254_vm3 = vcmask 523264   ;;  %s2889_s2 = inlined_call_operand.vmem [shape: f32[16,32], index: 2, kind: input, shape index: {}]   ;;  %s2890_s0 = inlined_call_operand.vmem [shape: f32[64,16], index: 0, kind: input, shape index: {}]   ;;  %s2891_s3 = inlined_call_operand.vmem [shape: f32[2,1,16], index: 3, kind: input, shape index: {}]   ;;  %s2892_s4 = inlined_call_operand.vmem [shape: f32[2,1,16], index: 4, kind: input, shape index: {}]   ;;  %s2893_s1 = inlined_call_operand.vmem [shape: bf16[64,64], index: 1, kind: input, shape index: {}]   ;;  %s2894_s5 = inlined_call_operand.vmem [shape: f32[32,8], index: 5, kind: input, shape index: {}]   ;;  %s2895_s6 = inlined_call_operand.vmem [shape: f32[1,8], index: 6, kind: input, shape index: {}]   ;;  %s2896_s7 = inlined_call_operand.vmem [shape: f32[1,8], index: 7, kind: input, shape index: {}]   ;;  %s2897_s8 = inlined_call_operand.vmem [shape: f32[64,8], index: 8, kind: output, shape index: {}]  }
   0x1   :  { %v62_v0 = vld [vmem:[%s2889_s2 + $0x8] sm:$0xff]  ;;  %v61_v1 = vld [vmem:[%s2889_s2] sm:$0xff]  ;;  %v55_v4 = vld [vmem:[%s2890_s0 + $0x10] sm:$0xff] }
   0x2   :  { %102 = vmatpush.msra.mxu0 %v62_v0  ;;  %v53_v2 = vld [vmem:[%s2890_s0] sm:$0xff]  ;;  %v54_v3 = vld [vmem:[%s2890_s0 + $0x8] sm:$0xff]  ;;  %v56_v5 = vld [vmem:[%s2890_s0 + $0x18] sm:$0xff] }
   0x3   :  { %v57_v6 = vld [vmem:[%s2890_s0 + $0x20] sm:$0xff]  ;;  %v58_v7 = vld [vmem:[%s2890_s0 + $0x28] sm:$0xff]  ;;  %v59_v8 = vld [vmem:[%s2890_s0 + $0x30] sm:$0xff] }
   0x4   :  { %103 = vmatpush.msra.mxu0 %v61_v1  ;;  %v60_v9 = vld [vmem:[%s2890_s0 + $0x38] sm:$0xff]  ;;  %v1814_v15 = vld [vmem:[%s2891_s3 + $0x1] ss:$0 sm:$0xff]  ;;  %v130_v37 = vld [vmem:[%s2892_s4] sm:$0x1] }
   0x5   :  { %1691 = vmatmul.msk.f32.vlgmr.msra.gmra.mxu0 %vm2898_vm0, %v53_v2  ;;  %v1725_v36 = vld [vmem:[%s2892_s4 + $0x1] sm:$0x1]  ;;  %v2184_v47 = vld [vmem:[%s2891_s3] ss:$0 sm:$0xff] }
   0x6   :  { %v1785_v2 = vld [vmem:[%s2893_s1] sm:$0xff]  }
   0xd   :  { %1692 = vmatmul.msk.f32.gmra.mxu0 %vm2898_vm0, %v54_v3 }
  0x15   :  { %1693 = vmatmul.msk.f32.gmra.mxu0 %vm2898_vm0, %v55_v4 }
  0x1d   :  { %1694 = vmatmul.msk.f32.gmra.mxu0 %vm2898_vm0, %v56_v5  ;;  %v1786_v5 = vunpack.c.l.bf16 %v1785_v2 }
  0x1f   :  { %vm2212_vm1 = vcmp.gt.f32.partialorder %v1786_v5, 0.0 }
  0x25   :  { %1695 = vmatmul.msk.f32.gmra.mxu0 %vm2898_vm0, %v57_v6 }
  0x2d   :  { %1696 = vmatmul.msk.f32.gmra.mxu0 %vm2898_vm0, %v58_v7 }
  0x35   :  { %1697 = vmatmul.msk.f32.gmra.mxu0 %vm2898_vm0, %v59_v8 }
  0x3d   :  { %1698 = vmatmul.msk.f32.gmra.mxu0 %vm2898_vm0, %v60_v9 }
  0x82   :  { %v2077_v10 = vpop.f32.mrf.mxu0 }
  0x83   :  { %v134_v49 = vmul.f32 %v2184_v47, %v2077_v10 }
  0x85   :  { %v142_v54 = vsel %vm2898_vm0, %v134_v49, 0.0 }
  0x8a   :  { %v2079_v11 = vpop.f32.mrf.mxu0 }
  0x8b   :  { %v135_v55 = vmul.f32 %v2184_v47, %v2079_v11 }
  0x8d   :  { %v145_v58 = vsel %vm2898_vm0, %v135_v55, 0.0 }
  0x92   :  { %v2081_v12 = vpop.f32.mrf.mxu0 }
  0x93   :  { %v136_v60 = vmul.f32 %v2184_v47, %v2081_v12 }
  0x95   :  { %v148_v62 = vsel %vm2898_vm0, %v136_v60, 0.0 }
  0x9a   :  { %v2083_v13 = vpop.f32.mrf.mxu0 }
  0x9b   :  { %639 = vrot.lane.b32.xlu2 %v2083_v13, %s1992_s24  ;;  %v137_v63 = vmul.f32 %v2184_v47, %v2083_v13 }
  0x9d   :  { %v151_v0 = vsel %vm2898_vm0, %v137_v63, 0.0 }
  0xa2   :  { %v2087_v14 = vpop.f32.mrf.mxu0 }
  0xa3   :  { %637 = vrot.lane.b32.xlu2 %v2081_v12, %s1992_s24  ;;  %v138_v59 = vmul.f32 %v2184_v47, %v2087_v14 }
  0xa5   :  { %v154_v61 = vsel %vm2898_vm0, %v138_v59, 0.0 }
  0xaa   :  { %v2094_v16 = vpop.f32.mrf.mxu0 }
  0xab   :  { %566 = vrot.lane.b32.xlu2 %v1814_v15, %s1993_s26  ;;  %643 = vrot.lane.b32.xlu1 %v2094_v16, %s1992_s24  ;;  %v1800_v15 = vld [vmem:[%s2893_s1 + $0x8] sm:$0xff]  }
  0xb2   :  { %v2099_v17 = vpop.f32.mrf.mxu0 }
  0xb3   :  { %641 = vrot.lane.b32.xlu1 %v2087_v14, %s1992_s24 }
  0xba   :  { %v2103_v18 = vpop.f32.mrf.mxu0 }
  0xbb   :  { %633 = vrot.lane.b32.xlu1 %v2077_v10, %s1992_s24  ;;  %647 = vrot.lane.b32.xlu0 %v2103_v18, %s1992_s24 }
  0xbc   :  { %1699 = vmatpush.xpose.msk.msra.mxu1 %vm2898_vm0, %v2103_v18  ;;  %479 = vmatpush.msrb.mxu0 %v2103_v18 }
  0xbd   :  { %1803 = vmatpush.msra.mxu2 %v2103_v18 }
  0xbe   :  { %480 = vmatpush.msrb.mxu0 %v2099_v17 }
  0xbf   :  { %1804 = vmatpush.msra.mxu2 %v2099_v17 }
  0xc0   :  { %1700 = vmatpush.xpose.msk.msra.mxu1 %vm2898_vm0, %v2099_v17  ;;  %481 = vmatpush.msrb.mxu0 %v2094_v16 }
  0xc1   :  { %1805 = vmatpush.msra.mxu2 %v2094_v16 }
  0xc2   :  { %482 = vmatpush.msrb.mxu0 %v2087_v14 }
  0xc3   :  { %1806 = vmatpush.msra.mxu2 %v2087_v14  ;;  %645 = vrot.lane.b32.xlu0 %v2099_v17, %s1992_s24 }
  0xc4   :  { %1701 = vmatpush.xpose.msk.msra.mxu1 %vm2898_vm0, %v2094_v16  ;;  %483 = vmatpush.msrb.mxu0 %v2083_v13 }
  0xc5   :  { %1807 = vmatpush.msra.mxu2 %v2083_v13 }
  0xc6   :  { %484 = vmatpush.msrb.mxu0 %v2081_v12 }
  0xc7   :  { %1808 = vmatpush.msra.mxu2 %v2081_v12 }
  0xc8   :  { %1702 = vmatpush.xpose.msk.msra.mxu1 %vm2898_vm0, %v2087_v14  ;;  %485 = vmatpush.msrb.mxu0 %v2079_v11 }
  0xc9   :  { %1809 = vmatpush.msra.mxu2 %v2079_v11 }
  0xca   :  { %486 = vmatpush.msrb.mxu0 %v2077_v10 }
  0xcb   :  { %1810 = vmatpush.msra.mxu2 %v2077_v10  ;;  %635 = vrot.lane.b32.xlu0 %v2079_v11, %s1992_s24 }
  0xcc   :  { %1703 = vmatpush.xpose.msk.msra.mxu1 %vm2898_vm0, %v2083_v13 }
  0xd0   :  { %1704 = vmatpush.xpose.msk.msra.mxu1 %vm2898_vm0, %v2081_v12 }
  0xd4   :  { %1705 = vmatpush.xpose.msk.msra.mxu1 %vm2898_vm0, %v2079_v11 }
  0xd8   :  { %1706 = vmatpush.xpose.msk.msra.mxu1 %vm2898_vm0, %v2077_v10 }
  0xdb   :  { %1707 = vmatmul.msk.f32.vlgmr.msra.gmra.mxu1 %vm2898_vm0, %v130_v37 }
  0xf5   :  { %v640_v19 = vpop.permute.xlu2 %639 }
  0xfd   :  { %v638_v20 = vpop.permute.xlu2 %637 }
 0x105   :  { %v567_v21 = vpop.permute.xlu2 %566 }
 0x106   :  { %v571_v22 = vmul.f32 %v567_v21, %v2081_v12  ;;  %v570_v23 = vmul.f32 %v567_v21, %v2079_v11  ;;  %v569_v24 = vmul.f32 %v567_v21, %v2077_v10  ;;  %v573_v25 = vmul.f32 %v567_v21, %v2087_v14  ;;  %v1801_v11 = vld [vmem:[%s2893_s1 + $0x10] sm:$0xff]  }
 0x107   :  { %v574_v26 = vmul.f32 %v567_v21, %v2094_v16  ;;  %v572_v27 = vmul.f32 %v567_v21, %v2083_v13  ;;  %v575_v28 = vmul.f32 %v567_v21, %v2099_v17  ;;  %v576_v29 = vmul.f32 %v567_v21, %v2103_v18 }
 0x108   :  { %589 = vrot.lane.b32.xlu2 %v571_v22, %s1992_s24  ;;  %587 = vrot.lane.b32.xlu1 %v570_v23, %s1992_s24  ;;  %v1787_v12 = vunpack.c.h.bf16 %v1785_v2  ;;  %v1791_v21 = vunpack.c.h.bf16 %v1800_v15  ;;  %v1794_v22 = vunpack.c.l.bf16 %v1801_v11 }
 0x109   :  { %585 = vrot.lane.b32.xlu0 %v569_v24, %s1992_s24 }
 0x10a   :  { %vm2228_vm5 = vcmp.gt.f32.partialorder %v1787_v12, 0.0  ;;  %vm2235_vm6 = vcmp.gt.f32.partialorder %v1791_v21, 0.0  ;;  %vm2239_vm7 = vcmp.gt.f32.partialorder %v1794_v22, 0.0  ;;  %v141_v12 = vmul.f32 %v2184_v47, %v2103_v18 }
 0x10c   :  { %v163_v22 = vsel %vm2898_vm0, %v141_v12, 0.0 }
 0x110   :  { %593 = vrot.lane.b32.xlu1 %v573_v25, %s1992_s24  ;;  %595 = vrot.lane.b32.xlu2 %v574_v26, %s1992_s24 }
 0x111   :  { %591 = vrot.lane.b32.xlu0 %v572_v27, %s1992_s24 }
 0x118   :  { %597 = vrot.lane.b32.xlu1 %v575_v28, %s1992_s24 }
 0x11d   :  { %v644_v30 = vpop.permute.xlu1 %643 }
 0x120   :  { %599 = vrot.lane.b32.xlu1 %v576_v29, %s1992_s24 }
 0x125   :  { %v642_v33 = vpop.permute.xlu1 %641 }
 0x12d   :  { %v648_v31 = vpop.permute.xlu0 %647  ;;  %v634_v35 = vpop.permute.xlu1 %633 }
 0x12e   :  { %1726 = vmatpush.xpose.msk.msra.mxu3 %vm2898_vm0, %v648_v31  ;;  %961 = vmatpush.msrb.mxu1 %v648_v31 }
 0x135   :  { %v646_v32 = vpop.permute.xlu0 %645 }
 0x136   :  { %1727 = vmatpush.xpose.msk.msra.mxu3 %vm2898_vm0, %v646_v32  ;;  %962 = vmatpush.msrb.mxu1 %v646_v32  ;;  %v2908_v32 = vmov 0 }
 0x137   :  { %v2909_v32 = vsel %vm2239_vm7, 4294967295, %v2908_v32 }
 0x138   :  { %963 = vmatpush.msrb.mxu1 %v644_v30 }
 0x13a   :  { %1728 = vmatpush.xpose.msk.msra.mxu3 %vm2898_vm0, %v644_v30  ;;  %964 = vmatpush.msrb.mxu1 %v642_v33 }
 0x13c   :  { %965 = vmatpush.msrb.mxu1 %v640_v19 }
 0x13d   :  { %v636_v34 = vpop.permute.xlu0 %635 }
 0x13e   :  { %1729 = vmatpush.xpose.msk.msra.mxu3 %vm2898_vm0, %v642_v33  ;;  %966 = vmatpush.msrb.mxu1 %v638_v20 }
 0x140   :  { %967 = vmatpush.msrb.mxu1 %v636_v34 }
 0x142   :  { %1730 = vmatpush.xpose.msk.msra.mxu3 %vm2898_vm0, %v640_v19  ;;  %968 = vmatpush.msrb.mxu1 %v634_v35 }
 0x146   :  { %1731 = vmatpush.xpose.msk.msra.mxu3 %vm2898_vm0, %v638_v20 }
 0x14a   :  { %1732 = vmatpush.xpose.msk.msra.mxu3 %vm2898_vm0, %v636_v34 }
 0x14e   :  { %1733 = vmatpush.xpose.msk.msra.mxu3 %vm2898_vm0, %v634_v35 }
 0x151   :  { %1734 = vmatmul.msk.f32.vlgmr.msra.gmra.mxu3 %vm2898_vm0, %v1725_v36 }
 0x162   :  { %v590_v38 = vpop.permute.xlu2 %589 }
 0x163   :  { %v615_v39 = vsel %vm2898_vm0, %v590_v38, 0.0 }
 0x164   :  { %616 = vadd.xlane.f32.xlu1 %v615_v39  ;;  %v1790_v39 = vunpack.c.l.bf16 %v1800_v15 }
 0x166   :  { %vm2262_vm11 = vcmp.gt.f32.partialorder %v1790_v39, 0.0 }
 0x16a   :  { %v596_v50 = vpop.permute.xlu2 %595 }
 0x16b   :  { %v624_v53 = vsel %vm2898_vm0, %v596_v50, 0.0 }
 0x17a   :  { %v588_v40 = vpop.permute.xlu1 %587 }
 0x17b   :  { %v586_v41 = vpop.permute.xlu0 %585  ;;  %v612_v42 = vsel %vm2898_vm0, %v588_v40, 0.0 }
 0x17c   :  { %613 = vadd.xlane.f32.xlu2 %v612_v42  ;;  %v609_v43 = vsel %vm2898_vm0, %v586_v41, 0.0 }
 0x17d   :  { %610 = vadd.xlane.f32.xlu0 %v609_v43 }
 0x182   :  { %v594_v44 = vpop.permute.xlu1 %593 }
 0x183   :  { %v592_v45 = vpop.permute.xlu0 %591  ;;  %v621_v46 = vsel %vm2898_vm0, %v594_v44, 0.0 }
 0x184   :  { %v618_v48 = vsel %vm2898_vm0, %v592_v45, 0.0 }
 0x185   :  { %622 = vadd.xlane.f32.xlu0 %v621_v46  ;;  %619 = vadd.xlane.f32.xlu2 %v618_v48  ;;  %v1795_v46 = vunpack.c.h.bf16 %v1801_v11  ;;  %v139_v11 = vmul.f32 %v2184_v47, %v2094_v16 }
 0x187   :  { %vm2269_vm12 = vcmp.gt.f32.partialorder %v1795_v46, 0.0 }
 0x18a   :  { %v598_v51 = vpop.permute.xlu1 %597 }
 0x18b   :  { %v627_v52 = vsel %vm2898_vm0, %v598_v51, 0.0 }
 0x18c   :  { %628 = vadd.xlane.f32.xlu1 %v627_v52 }
 0x18d   :  { %625 = vadd.xlane.f32.xlu0 %v624_v53  ;;  %143 = vadd.xlane.f32.xlu2 %v142_v54  ;;  %v210_v53 = vpop.f32.mrf.mxu1 }
 0x18e   :  { %v2280_v60 = vperm.slane %v210_v53, 0 }
 0x192   :  { %v600_v56 = vpop.permute.xlu1 %599 }
 0x193   :  { %v630_v57 = vsel %vm2898_vm0, %v600_v56, 0.0  ;;  %v140_v56 = vmul.f32 %v2184_v47, %v2099_v17 }
 0x194   :  { %631 = vadd.xlane.f32.xlu1 %v630_v57 }
 0x195   :  { %146 = vadd.xlane.f32.xlu2 %v145_v58  ;;  %v1802_v58 = vld [vmem:[%s2893_s1 + $0x18] sm:$0xff]  }
 0x196   :  { %v1798_v63 = vunpack.c.l.bf16 %v1802_v58 }
 0x198   :  { %vm2293_vm15 = vcmp.gt.f32.partialorder %v1798_v63, 0.0 }
 0x19c   :  { %155 = vadd.xlane.f32.xlu1 %v154_v61 }
 0x19d   :  { %149 = vadd.xlane.f32.xlu2 %v148_v62 }
 0x1a5   :  { %152 = vadd.xlane.f32.xlu2 %v151_v0  ;;  %v160_v0 = vsel %vm2898_vm0, %v140_v56, 0.0 }
 0x1d4   :  { %v685_v1 = vpop.f32.mrf.mxu3 }
 0x1d5   :  { %v2208_v3 = vperm.slane %v685_v1, 0 }
 0x1d7   :  { %v617_v19 = vpop.xlane.xlu1 %616 }
 0x1d8   :  { %v691_v27 = vadd.f32 %v2208_v3, %v617_v19  ;;  %v1799_v19 = vunpack.c.h.bf16 %v1802_v58 }
 0x1da   :  { %v707_v36 = vmul.f32 0.1, %v691_v27  ;;  %vm699_vm10 = vcmp.gt.f32.partialorder %v691_v27, 0.0 }
 0x1dc   :  { %v715_v52 = vsel %vm699_vm10, %v691_v27, %v707_v36 }
 0x1dd   :  { %v2278_v59 = vsel %vm2262_vm11, %v715_v52, -9e+15 }
 0x1de   :  { %v735_v2 = vsel %vm254_vm3, %v2278_v59, -inf }
 0x1ef   :  { %v614_v4 = vpop.xlane.xlu2 %613 }
 0x1f0   :  { %v611_v6 = vpop.xlane.xlu0 %610  ;;  %v690_v7 = vadd.f32 %v2208_v3, %v614_v4 }
 0x1f1   :  { %v689_v8 = vadd.f32 %v2208_v3, %v611_v6 }
 0x1f2   :  { %v706_v13 = vmul.f32 0.1, %v690_v7  ;;  %vm698_vm4 = vcmp.gt.f32.partialorder %v690_v7, 0.0 }
 0x1f3   :  { %v705_v9 = vmul.f32 0.1, %v689_v8  ;;  %vm697_vm2 = vcmp.gt.f32.partialorder %v689_v8, 0.0 }
 0x1f4   :  { %v714_v30 = vsel %vm698_vm4, %v690_v7, %v706_v13 }
 0x1f5   :  { %v713_v14 = vsel %vm697_vm2, %v689_v8, %v705_v9  ;;  %v2245_v35 = vsel %vm2228_vm5, %v714_v30, -9e+15  ;;  %v2914_v8 = vmov 0 }
 0x1f6   :  { %v2224_v20 = vsel %vm2212_vm1, %v713_v14, -9e+15  ;;  %v732_v43 = vsel %vm254_vm3, %v2245_v35, -inf  ;;  %v2915_v8 = vsel %vm2293_vm15, 4294967295, %v2914_v8 }
 0x1f7   :  { %v729_v23 = vsel %vm254_vm3, %v2224_v20, -inf }
 0x1f8   :  { %v620_v24 = vpop.xlane.xlu2 %619  ;;  %730 = vmax.xlane.f32.xlu0 %v729_v23  ;;  %v623_v25 = vpop.xlane.xlu0 %622 }
 0x1f9   :  { %v692_v28 = vadd.f32 %v2208_v3, %v620_v24  ;;  %v693_v29 = vadd.f32 %v2208_v3, %v623_v25  ;;  %v2916_v24 = vmov 0 }
 0x1fb   :  { %v708_v33 = vmul.f32 0.1, %v692_v28  ;;  %v709_v34 = vmul.f32 0.1, %v693_v29  ;;  %vm700_vm8 = vcmp.gt.f32.partialorder %v692_v28, 0.0  ;;  %vm701_vm9 = vcmp.gt.f32.partialorder %v693_v29, 0.0 }
 0x1fd   :  { %v716_v37 = vsel %vm700_vm8, %v692_v28, %v708_v33  ;;  %v717_v38 = vsel %vm701_vm9, %v693_v29, %v709_v34  ;;  %vm2311_vm8 = vcmp.gt.f32.partialorder %v1799_v19, 0.0 }
 0x1fe   :  { %v2249_v40 = vsel %vm2235_vm6, %v716_v37, -9e+15  ;;  %v2253_v41 = vsel %vm2239_vm7, %v717_v38, -9e+15  ;;  %v2917_v24 = vsel %vm2311_vm8, 4294967295, %v2916_v24 }
 0x1ff   :  { %v738_v42 = vsel %vm254_vm3, %v2249_v40, -inf  ;;  %v741_v44 = vsel %vm254_vm3, %v2253_v41, -inf  ;;  %v629_v45 = vpop.xlane.xlu1 %628 }
 0x200   :  { %739 = vmax.xlane.f32.xlu2 %v738_v42  ;;  %v144_v48 = vpop.xlane.xlu2 %143  ;;  %733 = vmax.xlane.f32.xlu0 %v732_v43  ;;  %v626_v49 = vpop.xlane.xlu0 %625  ;;  %v695_v54 = vadd.f32 %v2208_v3, %v629_v45 }
 0x201   :  { %v694_v50 = vadd.f32 %v2208_v3, %v626_v49  ;;  %742 = vmax.xlane.f32.xlu1 %v741_v44  ;;  %v214_v5 = vadd.f32 %v2280_v60, %v144_v48 }
 0x202   :  { %v711_v62 = vmul.f32 0.1, %v695_v54  ;;  %vm703_vm14 = vcmp.gt.f32.partialorder %v695_v54, 0.0 }
 0x203   :  { %v710_v55 = vmul.f32 0.1, %v694_v50  ;;  %vm702_vm13 = vcmp.gt.f32.partialorder %v694_v50, 0.0  ;;  %v230_v13 = vmul.f32 0.1, %v214_v5  ;;  %vm222_vm2 = vcmp.gt.f32.partialorder %v214_v5, 0.0 }
 0x204   :  { %v719_v9 = vsel %vm703_vm14, %v695_v54, %v711_v62 }
 0x205   :  { %v718_v61 = vsel %vm702_vm13, %v694_v50, %v710_v55  ;;  %v2303_v14 = vsel %vm2293_vm15, %v719_v9, -9e+15  ;;  %v238_v47 = vsel %vm222_vm2, %v214_v5, %v230_v13 }
 0x206   :  { %v2284_v17 = vsel %vm2269_vm12, %v718_v61, -9e+15  ;;  %v747_v16 = vsel %vm254_vm3, %v2303_v14, -inf  ;;  %v2317_v28 = vsel %vm2212_vm1, %v238_v47, -9e+15 }
 0x207   :  { %v744_v1 = vsel %vm254_vm3, %v2284_v17, -inf  ;;  %v632_v4 = vpop.xlane.xlu1 %631  ;;  %v255_v34 = vsel %vm254_vm3, %v2317_v28, -inf }
 0x208   :  { %161 = vadd.xlane.f32.xlu2 %v160_v0  ;;  %736 = vmax.xlane.f32.xlu0 %v735_v2  ;;  %v147_v6 = vpop.xlane.xlu2 %146  ;;  %v696_v7 = vadd.f32 %v2208_v3, %v632_v4  ;;  %v157_v3 = vsel %vm2898_vm0, %v139_v11, 0.0 }
 0x209   :  { %745 = vmax.xlane.f32.xlu1 %v744_v1  ;;  %v215_v18 = vadd.f32 %v2280_v60, %v147_v6 }
 0x20a   :  { %v712_v15 = vmul.f32 0.1, %v696_v7  ;;  %vm704_vm4 = vcmp.gt.f32.partialorder %v696_v7, 0.0 }
 0x20b   :  { %v231_v29 = vmul.f32 0.1, %v215_v18  ;;  %vm223_vm9 = vcmp.gt.f32.partialorder %v215_v18, 0.0 }
 0x20c   :  { %v720_v25 = vsel %vm704_vm4, %v696_v7, %v712_v15 }
 0x20d   :  { %v2321_v30 = vsel %vm2311_vm8, %v720_v25, -9e+15  ;;  %v239_v38 = vsel %vm223_vm9, %v215_v18, %v231_v29 }
 0x20e   :  { %v750_v36 = vsel %vm254_vm3, %v2321_v30, -inf  ;;  %v2330_v42 = vsel %vm2228_vm5, %v239_v38, -9e+15 }
 0x20f   :  { %v156_v21 = vpop.xlane.xlu1 %155  ;;  %v258_v46 = vsel %vm254_vm3, %v2330_v42, -inf }
 0x210   :  { %158 = vadd.xlane.f32.xlu0 %v157_v3  ;;  %164 = vadd.xlane.f32.xlu2 %v163_v22  ;;  %v218_v23 = vadd.f32 %v2280_v60, %v156_v21  ;;  %v150_v27 = vpop.xlane.xlu2 %149 }
 0x211   :  { %748 = vmax.xlane.f32.xlu1 %v747_v16  ;;  %v216_v37 = vadd.f32 %v2280_v60, %v150_v27 }
 0x212   :  { %v234_v33 = vmul.f32 0.1, %v218_v23  ;;  %vm226_vm10 = vcmp.gt.f32.partialorder %v218_v23, 0.0 }
 0x213   :  { %v232_v43 = vmul.f32 0.1, %v216_v37  ;;  %vm224_vm13 = vcmp.gt.f32.partialorder %v216_v37, 0.0 }
 0x214   :  { %v242_v39 = vsel %vm226_vm10, %v218_v23, %v234_v33 }
 0x215   :  { %v2334_v44 = vsel %vm2239_vm7, %v242_v39, -9e+15  ;;  %v240_v50 = vsel %vm224_vm13, %v216_v37, %v232_v43 }
 0x216   :  { %v267_v48 = vsel %vm254_vm3, %v2334_v44, -inf  ;;  %v2343_v52 = vsel %vm2262_vm11, %v240_v50, -9e+15 }
 0x217   :  { %v261_v54 = vsel %vm254_vm3, %v2343_v52, -inf }
 0x218   :  { %256 = vmax.xlane.f32.xlu0 %v255_v34  ;;  %v153_v45 = vpop.xlane.xlu2 %152 }
 0x219   :  { %751 = vmax.xlane.f32.xlu1 %v750_v36  ;;  %v217_v49 = vadd.f32 %v2280_v60, %v153_v45 }
 0x21b   :  { %v233_v53 = vmul.f32 0.1, %v217_v49  ;;  %vm225_vm14 = vcmp.gt.f32.partialorder %v217_v49, 0.0 }
 0x21d   :  { %v241_v55 = vsel %vm225_vm14, %v217_v49, %v233_v53 }
 0x21e   :  { %v2349_v56 = vsel %vm2235_vm6, %v241_v55, -9e+15 }
 0x21f   :  { %v264_v58 = vsel %vm254_vm3, %v2349_v56, -inf }
 0x220   :  { %259 = vmax.xlane.f32.xlu0 %v258_v46 }
 0x221   :  { %268 = vmax.xlane.f32.xlu1 %v267_v48 }
 0x228   :  { %262 = vmax.xlane.f32.xlu0 %v261_v54 }
 0x230   :  { %265 = vmax.xlane.f32.xlu0 %v264_v58 }
 0x26b   :  { %v731_v61 = vpop.xlane.xlu0 %730 }
 0x26c   :  { %v753_v62 = vsub.f32 %v2224_v20, %v731_v61 }
 0x26e   :  { %v761_v63 = vmul.f32 1.442695, %v753_v62 }
 0x270   :  { %1816 = vpow2.f32 %v761_v63 }
 0x273   :  { %v740_v0 = vpop.xlane.xlu2 %739  ;;  %v734_v1 = vpop.xlane.xlu0 %733 }
 0x274   :  { %v756_v2 = vsub.f32 %v2249_v40, %v740_v0  ;;  %v754_v4 = vsub.f32 %v2245_v35, %v734_v1  ;;  %v743_v5 = vpop.xlane.xlu1 %742 }
 0x275   :  { %v757_v22 = vsub.f32 %v2253_v41, %v743_v5 }
 0x276   :  { %v2356_v6 = vpop.eup %1816  ;;  %v767_v7 = vmul.f32 1.442695, %v756_v2  ;;  %v763_v9 = vmul.f32 1.442695, %v754_v4 }
 0x277   :  { %v777_v11 = vsel %vm254_vm3, %v2356_v6, 0.0  ;;  %v769_v25 = vmul.f32 1.442695, %v757_v22 }
 0x278   :  { %1818 = vpow2.f32 %v767_v7  ;;  %778 = vadd.xlane.f32.xlu2 %v777_v11 }
 0x279   :  { %1820 = vpow2.f32 %v763_v9 }
 0x27b   :  { %v162_v20 = vpop.xlane.xlu2 %161  ;;  %v737_v12 = vpop.xlane.xlu0 %736 }
 0x27c   :  { %v755_v13 = vsub.f32 %v2278_v59, %v737_v12  ;;  %v746_v15 = vpop.xlane.xlu1 %745  ;;  %v220_v16 = vadd.f32 %v2280_v60, %v162_v20 }
 0x27d   :  { %v758_v39 = vsub.f32 %v2284_v17, %v746_v15 }
 0x27e   :  { %v2361_v19 = vpop.eup %1818  ;;  %v765_v40 = vmul.f32 1.442695, %v755_v13  ;;  %v236_v27 = vmul.f32 0.1, %v220_v16  ;;  %vm228_vm9 = vcmp.gt.f32.partialorder %v220_v16, 0.0 }
 0x27f   :  { %v2363_v35 = vpop.eup %1820  ;;  %v786_v3 = vsel %vm254_vm3, %v2361_v19, 0.0  ;;  %v771_v50 = vmul.f32 1.442695, %v758_v39 }
 0x280   :  { %1822 = vpow2.f32 %v765_v40  ;;  %787 = vadd.xlane.f32.xlu1 %v786_v3  ;;  %v780_v21 = vsel %vm254_vm3, %v2363_v35, 0.0  ;;  %v244_v48 = vsel %vm228_vm9, %v220_v16, %v236_v27 }
 0x281   :  { %781 = vadd.xlane.f32.xlu2 %v780_v21  ;;  %1824 = vpow2.f32 %v769_v25  ;;  %v2393_v53 = vsel %vm2293_vm15, %v244_v48, -9e+15 }
 0x282   :  { %v273_v61 = vsel %vm254_vm3, %v2393_v53, -inf }
 0x283   :  { %v159_v59 = vpop.xlane.xlu0 %158  ;;  %v165_v18 = vpop.xlane.xlu2 %164 }
 0x284   :  { %v219_v47 = vadd.f32 %v2280_v60, %v159_v59  ;;  %v221_v23 = vadd.f32 %v2280_v60, %v165_v18  ;;  %v749_v36 = vpop.xlane.xlu1 %748 }
 0x285   :  { %v759_v58 = vsub.f32 %v2303_v14, %v749_v36 }
 0x286   :  { %v2373_v29 = vpop.eup %1822  ;;  %v235_v33 = vmul.f32 0.1, %v219_v47  ;;  %v237_v34 = vmul.f32 0.1, %v221_v23  ;;  %vm227_vm2 = vcmp.gt.f32.partialorder %v219_v47, 0.0  ;;  %vm229_vm4 = vcmp.gt.f32.partialorder %v221_v23, 0.0 }
 0x287   :  { %v783_v41 = vsel %vm254_vm3, %v2373_v29, 0.0  ;;  %v2395_v55 = vpop.eup %1824  ;;  %v773_v63 = vmul.f32 1.442695, %v759_v58 }
 0x288   :  { %v243_v37 = vsel %vm227_vm2, %v219_v47, %v235_v33  ;;  %v245_v38 = vsel %vm229_vm4, %v221_v23, %v237_v34 }
 0x289   :  { %784 = vadd.xlane.f32.xlu2 %v783_v41  ;;  %v2380_v60 = vsel %vm2269_vm12, %v243_v37, -9e+15  ;;  %v2384_v43 = vsel %vm2311_vm8, %v245_v38, -9e+15 }
 0x28a   :  { %v270_v45 = vsel %vm254_vm3, %v2380_v60, -inf  ;;  %v276_v46 = vsel %vm254_vm3, %v2384_v43, -inf }
 0x28b   :  { %271 = vmax.xlane.f32.xlu0 %v270_v45  ;;  %v257_v49 = vpop.xlane.xlu0 %256  ;;  %277 = vmax.xlane.f32.xlu1 %v276_v46 }
 0x28c   :  { %v279_v17 = vsub.f32 %v2317_v28, %v257_v49  ;;  %v752_v62 = vpop.xlane.xlu1 %751  ;;  %v789_v28 = vsel %vm254_vm3, %v2395_v55, 0.0 }
 0x28d   :  { %v760_v4 = vsub.f32 %v2321_v30, %v752_v62 }
 0x28e   :  { %v287_v54 = vmul.f32 1.442695, %v279_v17 }
 0x28f   :  { %v775_v9 = vmul.f32 1.442695, %v760_v4 }
 0x290   :  { %1826 = vpow2.f32 %v287_v54 }
 0x291   :  { %1828 = vpow2.f32 %v771_v50  ;;  %274 = vmax.xlane.f32.xlu2 %v273_v61 }
 0x292   :  { %1830 = vpow2.f32 %v773_v63 }
 0x293   :  { %790 = vadd.xlane.f32.xlu0 %v789_v28  ;;  %v260_v0 = vpop.xlane.xlu0 %259 }
 0x294   :  { %v280_v1 = vsub.f32 %v2330_v42, %v260_v0  ;;  %v269_v20 = vpop.xlane.xlu1 %268 }
 0x295   :  { %v283_v15 = vsub.f32 %v2334_v44, %v269_v20 }
 0x296   :  { %v2403_v2 = vpop.eup %1826  ;;  %v289_v14 = vmul.f32 1.442695, %v280_v1 }
 0x297   :  { %v2406_v5 = vpop.eup %1828  ;;  %v303_v7 = vsel %vm254_vm3, %v2403_v2, 0.0  ;;  %v295_v22 = vmul.f32 1.442695, %v283_v15 }
 0x298   :  { %1832 = vpow2.f32 %v289_v14  ;;  %v792_v11 = vsel %vm254_vm3, %v2406_v5, 0.0  ;;  %v2413_v13 = vpop.eup %1830 }
 0x299   :  { %304 = vadd.xlane.f32.xlu2 %v303_v7  ;;  %1834 = vpow2.f32 %v775_v9  ;;  %v795_v21 = vsel %vm254_vm3, %v2413_v13, 0.0 }
 0x29b   :  { %793 = vadd.xlane.f32.xlu0 %v792_v11  ;;  %v263_v42 = vpop.xlane.xlu0 %262 }
 0x29c   :  { %v281_v12 = vsub.f32 %v2343_v52, %v263_v42 }
 0x29e   :  { %v2415_v30 = vpop.eup %1832  ;;  %v291_v40 = vmul.f32 1.442695, %v281_v12 }
 0x29f   :  { %v306_v3 = vsel %vm254_vm3, %v2415_v30, 0.0  ;;  %v2422_v52 = vpop.eup %1834 }
 0x2a0   :  { %1836 = vpow2.f32 %v291_v40  ;;  %307 = vadd.xlane.f32.xlu1 %v306_v3  ;;  %v798_v23 = vsel %vm254_vm3, %v2422_v52, 0.0 }
 0x2a1   :  { %796 = vadd.xlane.f32.xlu2 %v795_v21  ;;  %1838 = vpow2.f32 %v295_v22 }
 0x2a3   :  { %v266_v16 = vpop.xlane.xlu0 %265 }
 0x2a4   :  { %v282_v59 = vsub.f32 %v2349_v56, %v266_v16 }
 0x2a6   :  { %v2425_v18 = vpop.eup %1836  ;;  %v293_v44 = vmul.f32 1.442695, %v282_v59 }
 0x2a7   :  { %v309_v47 = vsel %vm254_vm3, %v2425_v18, 0.0  ;;  %v2431_v25 = vpop.eup %1838 }
 0x2a8   :  { %1840 = vpow2.f32 %v293_v44  ;;  %310 = vadd.xlane.f32.xlu0 %v309_v47  ;;  %799 = vadd.xlane.f32.xlu1 %v798_v23  ;;  %v315_v56 = vsel %vm254_vm3, %v2431_v25, 0.0 }
 0x2ae   :  { %v2433_v27 = vpop.eup %1840 }
 0x2af   :  { %v312_v33 = vsel %vm254_vm3, %v2433_v27, 0.0 }
 0x2b0   :  { %316 = vadd.xlane.f32.xlu0 %v315_v56  ;;  %313 = vadd.xlane.f32.xlu2 %v312_v33 }
 0x2eb   :  { %v779_v34 = vpop.xlane.xlu2 %778 }
 0x2ec   :  { %1842 = vrcp.f32 %v779_v34  ;;  %v812_v45 = vand.u32 2147483648, %v779_v34  ;;  %v810_v48 = vand.u32 2147483647, %v779_v34  ;;  %vm806_vm13 = vweird.f32 %v779_v34 }
 0x2ee   :  { %v813_v17 = vor.u32 1.1754944e-38, %v812_v45  ;;  %vm811_vm2 = vcmp.eq.f32.partialorder %v810_v48, 8.507059e+37 }
 0x2f2   :  { %v1843_v36 = vpop.eup %1842 }
 0x2f3   :  { %v802_v41 = vmul.f32 %v1843_v36, %v779_v34  ;;  %v2439_v39 = vpop.xlane.xlu1 %787  ;;  %vm807_vm10 = vweird.f32 %v1843_v36 }
 0x2f4   :  { %v782_v37 = vpop.xlane.xlu2 %781  ;;  %vm808_vm14 = vmor %vm806_vm13, %vm807_vm10 }
 0x2f5   :  { %v803_v38 = vsub.f32 1.0, %v802_v41  ;;  %1844 = vrcp.f32 %v782_v37  ;;  %v826_v14 = vand.u32 2147483648, %v782_v37  ;;  %v824_v20 = vand.u32 2147483647, %v782_v37 }
 0x2f6   :  { %1846 = vrcp.f32 %v2439_v39  ;;  %vm820_vm9 = vweird.f32 %v782_v37 }
 0x2f7   :  { %v804_v46 = vmul.f32 %v1843_v36, %v803_v38  ;;  %v827_v21 = vor.u32 1.1754944e-38, %v826_v14  ;;  %vm825_vm13 = vcmp.eq.f32.partialorder %v824_v20, 8.507059e+37 }
 0x2f9   :  { %v805_v49 = vadd.f32 %v1843_v36, %v804_v46 }
 0x2fb   :  { %v1845_v50 = vpop.eup %1844  ;;  %v809_v54 = vsel %vm808_vm14, %v1843_v36, %v805_v49 }
 0x2fc   :  { %v816_v58 = vmul.f32 %v1845_v50, %v782_v37  ;;  %v785_v61 = vpop.xlane.xlu2 %784  ;;  %v814_v62 = vsel %vm811_vm2, %v813_v17, %v809_v54  ;;  %v2442_v28 = vpop.eup %1846  ;;  %vm821_vm4 = vweird.f32 %v1845_v50  ;;  %v854_v54 = vand.u32 2147483648, %v2439_v39 }
 0x2fd   :  { %1848 = vrcp.f32 %v785_v61  ;;  %v913_v4 = vmul.f32 %v2356_v6, %v814_v62  ;;  %v844_v42 = vmul.f32 %v2442_v28, %v2439_v39  ;;  %vm822_vm10 = vmor %vm820_vm9, %vm821_vm4  ;;  %v840_v34 = vand.u32 2147483648, %v785_v61 }
 0x2fe   :  { %v817_v63 = vsub.f32 1.0, %v816_v58  ;;  %v272_v0 = vpop.xlane.xlu0 %271  ;;  %v278_v1 = vpop.xlane.xlu1 %277  ;;  %vm834_vm2 = vweird.f32 %v785_v61 }
 0x2ff   :  { %v284_v7 = vsub.f32 %v2380_v60, %v272_v0  ;;  %v286_v9 = vsub.f32 %v2384_v43, %v278_v1  ;;  %1735 = vmatmul.msk.f32.vlgmr.msrb.gmra.mxu1 %vm254_vm3, %v913_v4  ;;  %v845_v22 = vsub.f32 1.0, %v844_v42  ;;  %v841_v46 = vor.u32 1.1754944e-38, %v840_v34 }
 0x300   :  { %v818_v11 = vmul.f32 %v1845_v50, %v817_v63  ;;  %v852_v0 = vand.u32 2147483647, %v2439_v39 }
 0x301   :  { %v297_v12 = vmul.f32 1.442695, %v284_v7  ;;  %v301_v15 = vmul.f32 1.442695, %v286_v9  ;;  %v846_v41 = vmul.f32 %v2442_v28, %v845_v22  ;;  %v855_v9 = vor.u32 1.1754944e-38, %v854_v54 }
 0x302   :  { %v819_v40 = vadd.f32 %v1845_v50, %v818_v11 }
 0x303   :  { %v1849_v3 = vpop.eup %1848  ;;  %1850 = vpow2.f32 %v297_v12 }
 0x304   :  { %v830_v6 = vmul.f32 %v1849_v3, %v785_v61  ;;  %1852 = vpow2.f32 %v301_v15  ;;  %v275_v60 = vpop.xlane.xlu2 %274  ;;  %v823_v43 = vsel %vm822_vm10, %v1845_v50, %v819_v40  ;;  %vm835_vm14 = vweird.f32 %v1849_v3 }
 0x305   :  { %v285_v16 = vsub.f32 %v2393_v53, %v275_v60  ;;  %v828_v59 = vsel %vm825_vm13, %v827_v21, %v823_v43  ;;  %v838_v53 = vand.u32 2147483647, %v785_v61  ;;  %vm836_vm4 = vmor %vm834_vm2, %vm835_vm14  ;;  %v847_v50 = vadd.f32 %v2442_v28, %v846_v41 }
 0x306   :  { %v831_v44 = vsub.f32 1.0, %v830_v6  ;;  %v2451_v47 = vpop.xlane.xlu0 %790  ;;  %v914_v23 = vmul.f32 %v2363_v35, %v828_v59  ;;  %vm849_vm10 = vweird.f32 %v2442_v28  ;;  %vm848_vm13 = vweird.f32 %v2439_v39 }
 0x307   :  { %v299_v56 = vmul.f32 1.442695, %v285_v16  ;;  %1854 = vrcp.f32 %v2451_v47  ;;  %vm839_vm9 = vcmp.eq.f32.partialorder %v838_v53, 8.507059e+37  ;;  %vm850_vm14 = vmor %vm848_vm13, %vm849_vm10  ;;  %vm853_vm2 = vcmp.eq.f32.partialorder %v852_v0, 8.507059e+37 }
 0x308   :  { %v832_v33 = vmul.f32 %v1849_v3, %v831_v44  ;;  %1736 = vmatmul.msk.f32.gmra.mxu1 %vm254_vm3, %v914_v23  ;;  %v851_v7 = vsel %vm850_vm14, %v2442_v28, %v847_v50  ;;  %v868_v28 = vand.u32 2147483648, %v2451_v47  ;;  %v866_v43 = vand.u32 2147483647, %v2451_v47 }
 0x309   :  { %v2456_v36 = vpop.eup %1850  ;;  %1856 = vpow2.f32 %v299_v56  ;;  %v856_v12 = vsel %vm853_vm2, %v855_v9, %v851_v7 }
 0x30a   :  { %v2459_v37 = vpop.eup %1852  ;;  %v318_v35 = vsel %vm254_vm3, %v2456_v36, 0.0  ;;  %v833_v38 = vadd.f32 %v1849_v3, %v832_v33  ;;  %v916_v60 = vmul.f32 %v2361_v19, %v856_v12  ;;  %v869_v44 = vor.u32 1.1754944e-38, %v868_v28 }
 0x30b   :  { %319 = vadd.xlane.f32.xlu1 %v318_v35  ;;  %v324_v45 = vsel %vm254_vm3, %v2459_v37, 0.0 }
 0x30c   :  { %325 = vadd.xlane.f32.xlu0 %v324_v45  ;;  %v2465_v48 = vpop.xlane.xlu2 %304  ;;  %v837_v49 = vsel %vm836_vm4, %v1849_v3, %v833_v38 }
 0x30d   :  { %v2467_v17 = vpop.eup %1854  ;;  %1858 = vrcp.f32 %v2465_v48  ;;  %v842_v62 = vsel %vm839_vm9, %v841_v46, %v837_v49  ;;  %v336_v6 = vand.u32 2147483647, %v2465_v48  ;;  %vm862_vm9 = vweird.f32 %v2451_v47 }
 0x30e   :  { %v858_v58 = vmul.f32 %v2467_v17, %v2451_v47  ;;  %v2475_v61 = vpop.xlane.xlu0 %793  ;;  %v915_v4 = vmul.f32 %v2373_v29, %v842_v62  ;;  %vm863_vm4 = vweird.f32 %v2467_v17  ;;  %v338_v16 = vand.u32 2147483648, %v2465_v48 }
 0x30f   :  { %v2477_v63 = vpop.eup %1856  ;;  %1860 = vrcp.f32 %v2475_v61  ;;  %vm2507_vm10 = vmor %vm862_vm9, %vm863_vm4  ;;  %vm332_vm14 = vweird.f32 %v2465_v48  ;;  %vm2521_vm2 = vcmp.eq.f32.partialorder %v336_v6, 8.507059e+37  ;;  %vm867_vm4 = vcmp.eq.f32.partialorder %v866_v43, 8.507059e+37 }
 0x310   :  { %v859_v1 = vsub.f32 1.0, %v858_v58  ;;  %v321_v14 = vsel %vm254_vm3, %v2477_v63, 0.0  ;;  %1737 = vmatmul.msk.f32.gmra.mxu1 %vm254_vm3, %v915_v4  ;;  %v339_v45 = vor.u32 1.1754944e-38, %v338_v16  ;;  %v882_v46 = vand.u32 2147483648, %v2475_v61 }
 0x311   :  { %322 = vadd.xlane.f32.xlu2 %v321_v14  ;;  %v880_v50 = vand.u32 2147483647, %v2475_v61 }
 0x312   :  { %v860_v11 = vmul.f32 %v2467_v17, %v859_v1  ;;  %v883_v12 = vor.u32 1.1754944e-38, %v882_v46 }
 0x313   :  { %v1859_v20 = vpop.eup %1858  ;;  %v2488_v42 = vpop.xlane.xlu1 %307 }
 0x314   :  { %v328_v39 = vmul.f32 %v1859_v20, %v2465_v48  ;;  %1862 = vrcp.f32 %v2488_v42  ;;  %v2492_v29 = vpop.xlane.xlu2 %796  ;;  %v861_v21 = vadd.f32 %v2467_v17, %v860_v11  ;;  %vm333_vm13 = vweird.f32 %v1859_v20 }
 0x315   :  { %v2494_v15 = vpop.eup %1860  ;;  %1864 = vrcp.f32 %v2492_v29  ;;  %vm334_vm9 = vmor %vm332_vm14, %vm333_vm13  ;;  %v352_v1 = vand.u32 2147483648, %v2488_v42  ;;  %vm876_vm14 = vweird.f32 %v2475_v61  ;;  %v350_v9 = vand.u32 2147483647, %v2488_v42 }
 0x316   :  { %v329_v40 = vsub.f32 1.0, %v328_v39  ;;  %v872_v3 = vmul.f32 %v2494_v15, %v2475_v61  ;;  %v865_v19 = vsel %vm2507_vm10, %v2467_v17, %v861_v21  ;;  %vm877_vm10 = vweird.f32 %v2494_v15 }
 0x317   :  { %v870_v17 = vsel %vm867_vm4, %v869_v44, %v865_v19  ;;  %vm346_vm4 = vweird.f32 %v2488_v42 }
 0x318   :  { %v330_v22 = vmul.f32 %v1859_v20, %v329_v40  ;;  %v873_v59 = vsub.f32 1.0, %v872_v3  ;;  %1738 = vmatmul.msk.f32.gmra.mxu1 %vm254_vm3, %v916_v60  ;;  %v917_v7 = vmul.f32 %v2395_v55, %v870_v17  ;;  %v896_v40 = vand.u32 2147483648, %v2492_v29 }
 0x31a   :  { %v2511_v56 = vpop.eup %1862  ;;  %v331_v33 = vadd.f32 %v1859_v20, %v330_v22  ;;  %v874_v34 = vmul.f32 %v2494_v15, %v873_v59 }
 0x31b   :  { %v2518_v47 = vpop.eup %1864  ;;  %v342_v53 = vmul.f32 %v2511_v56, %v2488_v42  ;;  %v2527_v35 = vpop.xlane.xlu0 %310  ;;  %vm347_vm13 = vweird.f32 %v2511_v56  ;;  %v353_v42 = vor.u32 1.1754944e-38, %v352_v1 }
 0x31c   :  { %v2529_v38 = vpop.xlane.xlu1 %799  ;;  %v886_v49 = vmul.f32 %v2518_v47, %v2492_v29  ;;  %1866 = vrcp.f32 %v2527_v35  ;;  %v335_v58 = vsel %vm334_vm9, %v1859_v20, %v331_v33  ;;  %v875_v62 = vadd.f32 %v2494_v15, %v874_v34  ;;  %vm2551_vm9 = vmor %vm876_vm14, %vm877_vm10 }
 0x31d   :  { %v343_v48 = vsub.f32 1.0, %v342_v53  ;;  %1868 = vrcp.f32 %v2529_v38  ;;  %v340_v4 = vsel %vm2521_vm2, %v339_v45, %v335_v58  ;;  %vm2558_vm2 = vmor %vm346_vm4, %vm347_vm13  ;;  %vm881_vm10 = vcmp.eq.f32.partialorder %v880_v50, 8.507059e+37 }
 0x31e   :  { %v887_v54 = vsub.f32 1.0, %v886_v49  ;;  %v439_v14 = vmul.f32 %v2403_v2, %v340_v4  ;;  %v879_v2 = vsel %vm2551_vm9, %v2494_v15, %v875_v62  ;;  %vm351_vm13 = vcmp.eq.f32.partialorder %v350_v9, 8.507059e+37 }
 0x31f   :  { %v344_v0 = vmul.f32 %v2511_v56, %v343_v48  ;;  %v894_v15 = vand.u32 2147483647, %v2492_v29  ;;  %v366_v16 = vand.u32 2147483648, %v2527_v35  ;;  %v884_v59 = vsel %vm881_vm10, %v883_v12, %v879_v2 }
 0x320   :  { %v888_v28 = vmul.f32 %v2518_v47, %v887_v54  ;;  %1708 = vmatmul.msk.f32.vlgmr.msrb.gmra.mxu0 %vm254_vm3, %v439_v14  ;;  %1739 = vmatmul.msk.f32.gmra.mxu1 %vm254_vm3, %v917_v7  ;;  %vm891_vm14 = vweird.f32 %v2518_v47  ;;  %v364_v19 = vand.u32 2147483647, %v2527_v35  ;;  %vm890_vm9 = vweird.f32 %v2492_v29 }
 0x321   :  { %v345_v11 = vadd.f32 %v2511_v56, %v344_v0  ;;  %v918_v41 = vmul.f32 %v2406_v5, %v884_v59  ;;  %vm2589_vm10 = vmor %vm890_vm9, %vm891_vm14  ;;  %v897_v49 = vor.u32 1.1754944e-38, %v896_v40  ;;  %v367_v48 = vor.u32 1.1754944e-38, %v366_v16 }
 0x322   :  { %v1867_v39 = vpop.eup %1866  ;;  %v889_v33 = vadd.f32 %v2518_v47, %v888_v28  ;;  %vm365_vm14 = vcmp.eq.f32.partialorder %v364_v19, 8.507059e+37  ;;  %vm895_vm9 = vcmp.eq.f32.partialorder %v894_v15, 8.507059e+37  ;;  %vm904_vm0 = vweird.f32 %v2529_v38 }
 0x323   :  { %v2565_v61 = vpop.eup %1868  ;;  %v356_v3 = vmul.f32 %v1867_v39, %v2527_v35  ;;  %v2569_v21 = vpop.xlane.xlu0 %316  ;;  %v349_v60 = vsel %vm2558_vm2, %v2511_v56, %v345_v11  ;;  %vm361_vm4 = vweird.f32 %v1867_v39  ;;  %vm360_vm2 = vweird.f32 %v2527_v35 }
 0x324   :  { %v2571_v6 = vpop.xlane.xlu2 %313  ;;  %v900_v43 = vmul.f32 %v2565_v61, %v2529_v38  ;;  %1870 = vrcp.f32 %v2569_v21  ;;  %v354_v23 = vsel %vm351_vm13, %v353_v42, %v349_v60  ;;  %vm362_vm13 = vmor %vm360_vm2, %vm361_vm4  ;;  %v893_v5 = vsel %vm2589_vm10, %v2518_v47, %v889_v33 }
 0x325   :  { %v357_v22 = vsub.f32 1.0, %v356_v3  ;;  %1872 = vrcp.f32 %v2571_v6  ;;  %v440_v34 = vmul.f32 %v2415_v30, %v354_v23  ;;  %v910_v50 = vand.u32 2147483648, %v2529_v38 }
 0x326   :  { %v901_v44 = vsub.f32 1.0, %v900_v43  ;;  %v394_v0 = vand.u32 2147483648, %v2569_v21  ;;  %v898_v1 = vsel %vm895_vm9, %v897_v49, %v893_v5  ;;  %v908_v4 = vand.u32 2147483647, %v2529_v38 }
 0x327   :  { %v358_v56 = vmul.f32 %v1867_v39, %v357_v22  ;;  %vm905_vm4 = vweird.f32 %v2565_v61  ;;  %v380_v11 = vand.u32 2147483648, %v2571_v6  ;;  %v392_v20 = vand.u32 2147483647, %v2569_v21 }
 0x328   :  { %v902_v17 = vmul.f32 %v2565_v61, %v901_v44  ;;  %1709 = vmatmul.msk.f32.gmra.mxu0 %vm254_vm3, %v440_v34  ;;  %1740 = vmatmul.msk.f32.gmra.mxu1 %vm254_vm3, %v918_v41  ;;  %v919_v12 = vmul.f32 %v2413_v13, %v898_v1  ;;  %v378_v28 = vand.u32 2147483647, %v2571_v6  ;;  %v395_v2 = vor.u32 1.1754944e-38, %v394_v0 }
 0x329   :  { %v359_v53 = vadd.f32 %v1867_v39, %v358_v56  ;;  %vm374_vm9 = vweird.f32 %v2571_v6  ;;  %v911_v40 = vor.u32 1.1754944e-38, %v910_v50  ;;  %v381_v3 = vor.u32 1.1754944e-38, %v380_v11 }
 0x32a   :  { %v1871_v46 = vpop.eup %1870  ;;  %v903_v7 = vadd.f32 %v2565_v61, %v902_v17  ;;  %vm909_vm15 = vcmp.eq.f32.partialorder %v908_v4, 8.507059e+37 }
 0x32b   :  { %v1873_v30 = vpop.eup %1872  ;;  %v384_v29 = vmul.f32 %v1871_v46, %v2569_v21  ;;  %v363_v35 = vsel %vm362_vm13, %v1867_v39, %v359_v53  ;;  %vm389_vm2 = vweird.f32 %v1871_v46  ;;  %vm388_vm13 = vweird.f32 %v2569_v21 }
 0x32c   :  { %v370_v54 = vmul.f32 %v1873_v30, %v2571_v6  ;;  %v368_v58 = vsel %vm365_vm14, %v367_v48, %v363_v35  ;;  %vm375_vm10 = vweird.f32 %v1873_v30  ;;  %vm2615_vm14 = vmor %vm904_vm0, %vm905_vm4  ;;  %vm393_vm0 = vcmp.eq.f32.partialorder %v392_v20, 8.507059e+37 }
 0x32d   :  { %v385_v62 = vsub.f32 1.0, %v384_v29  ;;  %v441_v14 = vmul.f32 %v2425_v18, %v368_v58  ;;  %vm390_vm8 = vmor %vm388_vm13, %vm389_vm2  ;;  %v907_v42 = vsel %vm2615_vm14, %v2565_v61, %v903_v7  ;;  %vm379_vm4 = vcmp.eq.f32.partialorder %v378_v28, 8.507059e+37 }
 0x32e   :  { %v371_v47 = vsub.f32 1.0, %v370_v54  ;;  %vm376_vm7 = vmor %vm374_vm9, %vm375_vm10  ;;  %v912_v15 = vsel %vm909_vm15, %v911_v40, %v907_v42 }
 0x32f   :  { %v386_v9 = vmul.f32 %v1871_v46, %v385_v62  ;;  %v920_v16 = vmul.f32 %v2422_v52, %v912_v15 }
 0x330   :  { %v372_v39 = vmul.f32 %v1873_v30, %v371_v47  ;;  %1710 = vmatmul.msk.f32.gmra.mxu0 %vm254_vm3, %v441_v14  ;;  %1741 = vmatmul.msk.f32.gmra.mxu1 %vm254_vm3, %v919_v12 }
 0x331   :  { %v387_v55 = vadd.f32 %v1871_v46, %v386_v9 }
 0x332   :  { %v373_v13 = vadd.f32 %v1873_v30, %v372_v39 }
 0x333   :  { %v391_v38 = vsel %vm390_vm8, %v1871_v46, %v387_v55 }
 0x334   :  { %v377_v21 = vsel %vm376_vm7, %v1873_v30, %v373_v13  ;;  %v396_v60 = vsel %vm393_vm0, %v395_v2, %v391_v38 }
 0x335   :  { %v382_v6 = vsel %vm379_vm4, %v381_v3, %v377_v21  ;;  %v443_v43 = vmul.f32 %v2431_v25, %v396_v60 }
 0x336   :  { %v442_v22 = vmul.f32 %v2433_v27, %v382_v6 }
 0x337   :  { %1712 = vmatmul.msk.f32.vlgmr.msra.gmra.mxu2 %vm254_vm3, %v443_v43 }
 0x338   :  { %1711 = vmatmul.msk.f32.gmra.mxu0 %vm254_vm3, %v442_v22  ;;  %1742 = vmatmul.msk.f32.gmra.mxu1 %vm254_vm3, %v920_v16 }
 0x37c   :  { %v970_v61 = vpop.f32.mrf.mxu1 }
 0x37d   :  { %v1002_v59 = vmin.f32 %v970_v61, 0.0  ;;  %vm994_vm7 = vcmp.gt.f32.partialorder %v970_v61, 0.0 }
 0x37e   :  { %v320_v44 = vpop.xlane.xlu1 %319 }
 0x37f   :  { %v2631_v23 = vpop.xlane.xlu0 %325  ;;  %1874 = vrcp.f32 %v320_v44  ;;  %v1010_v33 = vmul.f32 1.442695, %v1002_v59  ;;  %v408_v46 = vand.u32 2147483648, %v320_v44  ;;  %v406_v48 = vand.u32 2147483647, %v320_v44 }
 0x380   :  { %1876 = vrcp.f32 %v2631_v23  ;;  %vm402_vm8 = vweird.f32 %v320_v44  ;;  %v436_v40 = vand.u32 2147483648, %v2631_v23  ;;  %v434_v60 = vand.u32 2147483647, %v2631_v23 }
 0x381   :  { %1878 = vpow2.f32 %v1010_v33  ;;  %v409_v54 = vor.u32 1.1754944e-38, %v408_v46  ;;  %vm407_vm10 = vcmp.eq.f32.partialorder %v406_v48, 8.507059e+37 }
 0x382   :  { %v437_v22 = vor.u32 1.1754944e-38, %v436_v40 }
 0x384   :  { %v323_v25 = vpop.xlane.xlu2 %322 }
 0x385   :  { %v1875_v27 = vpop.eup %1874  ;;  %1880 = vrcp.f32 %v323_v25  ;;  %v973_v56 = vpop.f32.mrf.mxu1  ;;  %v422_v1 = vand.u32 2147483648, %v323_v25  ;;  %v420_v14 = vand.u32 2147483647, %v323_v25  ;;  %vm416_vm14 = vweird.f32 %v323_v25 }
 0x386   :  { %v398_v34 = vmul.f32 %v1875_v27, %v320_v44  ;;  %v1003_v52 = vmin.f32 %v973_v56, 0.0  ;;  %v2634_v19 = vpop.eup %1876  ;;  %vm403_vm15 = vweird.f32 %v1875_v27  ;;  %vm995_vm9 = vcmp.gt.f32.partialorder %v973_v56, 0.0 }
 0x387   :  { %v1879_v41 = vpop.eup %1878  ;;  %v426_v17 = vmul.f32 %v2634_v19, %v2631_v23  ;;  %vm404_vm2 = vmor %vm402_vm8, %vm403_vm15  ;;  %v423_v18 = vor.u32 1.1754944e-38, %v422_v1  ;;  %vm421_vm4 = vcmp.eq.f32.partialorder %v420_v14, 8.507059e+37  ;;  %vm430_vm15 = vweird.f32 %v2631_v23  ;;  %v1083_v14 = vld [vmem:[%s2894_s5 + $0x8] sm:$0xff] }
 0x388   :  { %v399_v53 = vsub.f32 1.0, %v398_v34  ;;  %v1012_v45 = vmul.f32 1.442695, %v1003_v52  ;;  %v1743_v49 = vadd.f32 -1.0, %v1879_v41 }
 0x389   :  { %v427_v58 = vsub.f32 1.0, %v426_v17 }
 0x38a   :  { %v400_v5 = vmul.f32 %v1875_v27, %v399_v53  ;;  %1882 = vpow2.f32 %v1012_v45  ;;  %v1034_v29 = vsel %vm994_vm7, %v970_v61, %v1743_v49  ;;  %vm431_vm7 = vweird.f32 %v2634_v19 }
 0x38b   :  { %v1881_v30 = vpop.eup %1880  ;;  %1050 = vrot.lane.b32.xlu1 %v1034_v29, %s1993_s26  ;;  %v428_v12 = vmul.f32 %v2634_v19, %v427_v58  ;;  %vm432_vm8 = vmor %vm430_vm15, %vm431_vm7  ;;  %vm1086_vm15 = vcmask 261120  }
 0x38c   :  { %v412_v35 = vmul.f32 %v1881_v30, %v323_v25  ;;  %v401_v50 = vadd.f32 %v1875_v27, %v400_v5  ;;  %vm417_vm13 = vweird.f32 %v1881_v30 }
 0x38d   :  { %v976_v4 = vpop.f32.mrf.mxu1  ;;  %vm418_vm0 = vmor %vm416_vm14, %vm417_vm13 }
 0x38e   :  { %v413_v62 = vsub.f32 1.0, %v412_v35  ;;  %v405_v0 = vsel %vm404_vm2, %v1875_v27, %v401_v50  ;;  %v1004_v11 = vmin.f32 %v976_v4, 0.0  ;;  %vm996_vm2 = vcmp.gt.f32.partialorder %v976_v4, 0.0 }
 0x38f   :  { %v410_v47 = vsel %vm407_vm10, %v409_v54, %v405_v0  ;;  %vm435_vm10 = vcmp.eq.f32.partialorder %v434_v60, 8.507059e+37 }
 0x390   :  { %v1883_v7 = vpop.eup %1882  ;;  %v414_v9 = vmul.f32 %v1881_v30, %v413_v62  ;;  %v444_v20 = vmul.f32 %v2456_v36, %v410_v47  ;;  %v1014_v28 = vmul.f32 1.442695, %v1004_v11  ;;  %v429_v36 = vadd.f32 %v2634_v19, %v428_v12  ;;  %v1084_v47 = vld [vmem:[%s2894_s5 + $0x10] sm:$0xff] }
 0x391   :  { %v1744_v39 = vadd.f32 -1.0, %v1883_v7  ;;  %v1082_v7 = vld [vmem:[%s2894_s5] sm:$0xff] }
 0x392   :  { %1713 = vmatmul.msk.f32.gmra.mxu2 %vm254_vm3, %v444_v20  ;;  %v415_v55 = vadd.f32 %v1881_v30, %v414_v9  ;;  %1884 = vpow2.f32 %v1014_v28  ;;  %v433_v15 = vsel %vm432_vm8, %v2634_v19, %v429_v36  ;;  %vm2930_vm8 = vcmask 130048  }
 0x393   :  { %v1035_v2 = vsel %vm995_vm9, %v973_v56, %v1744_v39  ;;  %v438_v59 = vsel %vm435_vm10, %v437_v22, %v433_v15  ;;  %vm2931_vm10 = vmmov %vm2930_vm8 }
 0x394   :  { %1052 = vrot.lane.b32.xlu2 %v1035_v2, %s1993_s26  ;;  %v419_v13 = vsel %vm418_vm0, %v1881_v30, %v415_v55  ;;  %v446_v23 = vmul.f32 %v2459_v37, %v438_v59 }
 0x395   :  { %v424_v42 = vsel %vm421_vm4, %v423_v18, %v419_v13  ;;  %v979_v3 = vpop.f32.mrf.mxu1 }
 0x396   :  { %v1005_v38 = vmin.f32 %v979_v3, 0.0  ;;  %v445_v21 = vmul.f32 %v2477_v63, %v424_v42  ;;  %vm997_vm13 = vcmp.gt.f32.partialorder %v979_v3, 0.0 }
 0x398   :  { %v1885_v6 = vpop.eup %1884  ;;  %v1016_v43 = vmul.f32 1.442695, %v1005_v38 }
 0x399   :  { %v1745_v16 = vadd.f32 -1.0, %v1885_v6 }
 0x39a   :  { %1714 = vmatmul.msk.f32.gmra.mxu2 %vm254_vm3, %v445_v21  ;;  %1886 = vpow2.f32 %v1016_v43 }
 0x39b   :  { %v1036_v61 = vsel %vm996_vm2, %v976_v4, %v1745_v16  ;;  %v1085_v4 = vld [vmem:[%s2894_s5 + $0x18] sm:$0xff] }
 0x39c   :  { %1054 = vrot.lane.b32.xlu0 %v1036_v61, %s1993_s26  ;;  %1123 = vmatpush.msrb.mxu3 %v1085_v4 }
 0x39d   :  { %v982_v44 = vpop.f32.mrf.mxu1  ;;  %v488_v9 = vpop.f32.mrf.mxu0 }
 0x39e   :  { %v1006_v63 = vmin.f32 %v982_v44, 0.0  ;;  %vm998_vm14 = vcmp.gt.f32.partialorder %v982_v44, 0.0  ;;  %1124 = vmatpush.msrb.mxu3 %v1084_v47  ;;  %v520_v11 = vmin.f32 %v488_v9, 0.0  ;;  %vm512_vm7 = vcmp.gt.f32.partialorder %v488_v9, 0.0 }
 0x3a0   :  { %v1887_v33 = vpop.eup %1886  ;;  %v1018_v25 = vmul.f32 1.442695, %v1006_v63  ;;  %1125 = vmatpush.msrb.mxu3 %v1083_v14  ;;  %v528_v39 = vmul.f32 1.442695, %v520_v11 }
 0x3a1   :  { %v1746_v27 = vadd.f32 -1.0, %v1887_v33 }
 0x3a2   :  { %1715 = vmatmul.msk.f32.gmra.mxu2 %vm254_vm3, %v446_v23  ;;  %1888 = vpow2.f32 %v1018_v25  ;;  %1126 = vmatpush.msrb.mxu3 %v1082_v7 }
 0x3a3   :  { %v1037_v56 = vsel %vm997_vm13, %v979_v3, %v1746_v27 }
 0x3a4   :  { %1056 = vrot.lane.b32.xlu1 %v1037_v56, %s1993_s26 }
 0x3a5   :  { %v985_v34 = vpop.f32.mrf.mxu1  ;;  %v491_v20 = vpop.f32.mrf.mxu0 }
 0x3a6   :  { %v1007_v52 = vmin.f32 %v985_v34, 0.0  ;;  %vm999_vm9 = vcmp.gt.f32.partialorder %v985_v34, 0.0  ;;  %v521_v12 = vmin.f32 %v491_v20, 0.0  ;;  %vm513_vm2 = vcmp.gt.f32.partialorder %v491_v20, 0.0 }
 0x3a8   :  { %v1020_v19 = vmul.f32 1.442695, %v1007_v52  ;;  %v1889_v41 = vpop.eup %1888  ;;  %v530_v28 = vmul.f32 1.442695, %v521_v12 }
 0x3a9   :  { %v1747_v53 = vadd.f32 -1.0, %v1889_v41 }
 0x3aa   :  { %1890 = vpow2.f32 %v1020_v19 }
 0x3ab   :  { %v1038_v45 = vsel %vm998_vm14, %v982_v44, %v1747_v53  ;;  %vm2932_vm14 = vmmov %vm2930_vm8 }
 0x3ac   :  { %1058 = vrot.lane.b32.xlu0 %v1038_v45, %s1993_s26 }
 0x3ad   :  { %v988_v37 = vpop.f32.mrf.mxu1  ;;  %v494_v55 = vpop.f32.mrf.mxu0 }
 0x3ae   :  { %v1008_v46 = vmin.f32 %v988_v37, 0.0  ;;  %vm1000_vm0 = vcmp.gt.f32.partialorder %v988_v37, 0.0  ;;  %v522_v13 = vmin.f32 %v494_v55, 0.0  ;;  %vm514_vm13 = vcmp.gt.f32.partialorder %v494_v55, 0.0 }
 0x3b0   :  { %v1022_v49 = vmul.f32 1.442695, %v1008_v46  ;;  %v1891_v48 = vpop.eup %1890  ;;  %v532_v3 = vmul.f32 1.442695, %v522_v13 }
 0x3b1   :  { %v1748_v17 = vadd.f32 -1.0, %v1891_v48 }
 0x3b2   :  { %1892 = vpow2.f32 %v1022_v49 }
 0x3b3   :  { %v1039_v5 = vsel %vm999_vm9, %v985_v34, %v1748_v17 }
 0x3b4   :  { %1060 = vrot.lane.b32.xlu2 %v1039_v5, %s1993_s26 }
 0x3b5   :  { %v991_v30 = vpop.f32.mrf.mxu1  ;;  %v497_v21 = vpop.f32.mrf.mxu0 }
 0x3b6   :  { %v1009_v29 = vmin.f32 %v991_v30, 0.0  ;;  %vm1001_vm4 = vcmp.gt.f32.partialorder %v991_v30, 0.0  ;;  %v523_v6 = vmin.f32 %v497_v21, 0.0  ;;  %vm515_vm9 = vcmp.gt.f32.partialorder %v497_v21, 0.0 }
 0x3b8   :  { %v1024_v35 = vmul.f32 1.442695, %v1009_v29  ;;  %v1893_v50 = vpop.eup %1892  ;;  %v534_v22 = vmul.f32 1.442695, %v523_v6 }
 0x3b9   :  { %v1749_v54 = vadd.f32 -1.0, %v1893_v50 }
 0x3ba   :  { %1894 = vpow2.f32 %v1024_v35  ;;  %v500_v59 = vpop.f32.mrf.mxu2 }
 0x3bb   :  { %v1040_v58 = vsel %vm1000_vm0, %v988_v37, %v1749_v54  ;;  %1896 = vpow2.f32 %v528_v39  ;;  %v524_v63 = vmin.f32 %v500_v59, 0.0  ;;  %vm2933_vm0 = vmmov %vm2930_vm8 }
 0x3bc   :  { %1062 = vrot.lane.b32.xlu1 %v1040_v58, %s1993_s26  ;;  %1898 = vpow2.f32 %v530_v28 }
 0x3bd   :  { %1900 = vpow2.f32 %v532_v3  ;;  %v536_v33 = vmul.f32 1.442695, %v524_v63 }
 0x3be   :  { %1902 = vpow2.f32 %v534_v22 }
 0x3bf   :  { %1904 = vpow2.f32 %v536_v33 }
 0x3c0   :  { %v1895_v62 = vpop.eup %1894 }
 0x3c1   :  { %v1750_v0 = vadd.f32 -1.0, %v1895_v62  ;;  %v1897_v18 = vpop.eup %1896 }
 0x3c2   :  { %v1716_v2 = vadd.f32 -1.0, %v1897_v18  ;;  %v1899_v40 = vpop.eup %1898 }
 0x3c3   :  { %v1041_v1 = vsel %vm1001_vm4, %v991_v30, %v1750_v0  ;;  %v1717_v60 = vadd.f32 -1.0, %v1899_v40  ;;  %v1901_v61 = vpop.eup %1900  ;;  %vm516_vm4 = vcmp.gt.f32.partialorder %v500_v59, 0.0 }
 0x3c4   :  { %1064 = vrot.lane.b32.xlu0 %v1041_v1, %s1993_s26  ;;  %v552_v42 = vsel %vm512_vm7, %v488_v9, %v1716_v2  ;;  %v1718_v44 = vadd.f32 -1.0, %v1901_v61  ;;  %v1903_v27 = vpop.eup %1902  ;;  %vm2934_vm7 = vmmov %vm2933_vm0  ;;  %v1815_v2 = vld [vmem:[%s2895_s6] ss:$0 sm:$0xff] }
 0x3c5   :  { %v553_v15 = vsel %vm513_vm2, %v491_v20, %v1717_v60  ;;  %v1719_v34 = vadd.f32 -1.0, %v1903_v27  ;;  %v1905_v46 = vpop.eup %1904  ;;  %vm2935_vm2 = vmmov %vm2933_vm0 }
 0x3c6   :  { %v554_v23 = vsel %vm514_vm13, %v494_v55, %v1718_v44  ;;  %v1720_v49 = vadd.f32 -1.0, %v1905_v46  ;;  %vm2936_vm13 = vmmov %vm2933_vm0 }
 0x3c7   :  { %v555_v41 = vsel %vm515_vm9, %v497_v21, %v1719_v34  ;;  %vm2937_vm9 = vmmov %vm2933_vm0 }
 0x3c8   :  { %v556_v29 = vsel %vm516_vm4, %v500_v59, %v1720_v49 }
 0x3ee   :  { %v1053_v43 = vpop.permute.xlu2 %1052 }
 0x3ef   :  { %v1075_v16 = vsel %vm2931_vm10, %v553_v15, %v1053_v43 }
 0x3fd   :  { %v1051_v36 = vpop.permute.xlu1 %1050 }
 0x3fe   :  { %v1074_v38 = vsel %vm2930_vm8, %v552_v42, %v1051_v36 }
 0x3ff   :  { %1751 = vmatmul.msk.f32.vlgmr.msrb.gmra.mxu3 %vm1086_vm15, %v1074_v38 }
 0x407   :  { %1752 = vmatmul.msk.f32.gmra.mxu3 %vm1086_vm15, %v1075_v16 }
 0x40e   :  { %v1055_v25 = vpop.permute.xlu0 %1054  ;;  %v1061_v4 = vpop.permute.xlu2 %1060 }
 0x40f   :  { %v1076_v56 = vsel %vm2932_vm14, %v554_v23, %v1055_v25 }
 0x410   :  { %1753 = vmatmul.msk.f32.gmra.mxu3 %vm1086_vm15, %v1076_v56 }
 0x415   :  { %v503_v52 = vpop.f32.mrf.mxu2 }
 0x416   :  { %v525_v19 = vmin.f32 %v503_v52, 0.0  ;;  %v1057_v45 = vpop.permute.xlu1 %1056  ;;  %vm517_vm8 = vcmp.gt.f32.partialorder %v503_v52, 0.0 }
 0x417   :  { %v1077_v37 = vsel %vm2933_vm0, %v555_v41, %v1057_v45  ;;  %vm1165_vm0 = vcmask 64512  }
 0x418   :  { %v538_v53 = vmul.f32 1.442695, %v525_v19  ;;  %1754 = vmatmul.msk.f32.gmra.mxu3 %vm1086_vm15, %v1077_v37 }
 0x41a   :  { %1906 = vpow2.f32 %v538_v53 }
 0x41d   :  { %v506_v48 = vpop.f32.mrf.mxu2 }
 0x41e   :  { %v526_v17 = vmin.f32 %v506_v48, 0.0  ;;  %v1059_v35 = vpop.permute.xlu0 %1058  ;;  %vm518_vm10 = vcmp.gt.f32.partialorder %v506_v48, 0.0 }
 0x41f   :  { %v1078_v50 = vsel %vm2934_vm7, %v556_v29, %v1059_v35 }
 0x420   :  { %v1907_v5 = vpop.eup %1906  ;;  %v540_v30 = vmul.f32 1.442695, %v526_v17  ;;  %1755 = vmatmul.msk.f32.gmra.mxu3 %vm1086_vm15, %v1078_v50 }
 0x421   :  { %v1721_v54 = vadd.f32 -1.0, %v1907_v5 }
 0x422   :  { %1908 = vpow2.f32 %v540_v30 }
 0x423   :  { %v557_v0 = vsel %vm517_vm8, %v503_v52, %v1721_v54  ;;  %v1153_v52 = vld [vmem:[%s2896_s7] sm:$0x1] }
 0x424   :  { %v1079_v14 = vsel %vm2935_vm2, %v557_v0, %v1061_v4 }
 0x425   :  { %v509_v58 = vpop.f32.mrf.mxu2 }
 0x426   :  { %v527_v62 = vmin.f32 %v509_v58, 0.0  ;;  %vm519_vm14 = vcmp.gt.f32.partialorder %v509_v58, 0.0 }
 0x428   :  { %v542_v1 = vmul.f32 1.442695, %v527_v62  ;;  %v1909_v47 = vpop.eup %1908  ;;  %1756 = vmatmul.msk.f32.gmra.mxu3 %vm1086_vm15, %v1079_v14 }
 0x429   :  { %v1722_v7 = vadd.f32 -1.0, %v1909_v47 }
 0x42a   :  { %1910 = vpow2.f32 %v542_v1 }
 0x42b   :  { %v558_v9 = vsel %vm518_vm10, %v506_v48, %v1722_v7  ;;  %vm2940_vm10 = vnez %v2917_v24 }
 0x42e   :  { %v1063_v11 = vpop.permute.xlu1 %1062 }
 0x42f   :  { %v1080_v39 = vsel %vm2936_vm13, %v558_v9, %v1063_v11 }
 0x430   :  { %v1911_v20 = vpop.eup %1910  ;;  %1757 = vmatmul.msk.f32.gmra.mxu3 %vm1086_vm15, %v1080_v39 }
 0x431   :  { %v1723_v12 = vadd.f32 -1.0, %v1911_v20 }
 0x433   :  { %v559_v28 = vsel %vm519_vm14, %v509_v58, %v1723_v12 }
 0x436   :  { %v1065_v55 = vpop.permute.xlu0 %1064 }
 0x437   :  { %v1081_v18 = vsel %vm2937_vm9, %v559_v28, %v1065_v55 }
 0x438   :  { %1758 = vmatmul.msk.f32.gmra.mxu3 %vm1086_vm15, %v1081_v18 }
 0x482   :  { %v1128_v13 = vpop.f32.mrf.mxu3 }
 0x483   :  { %v1157_v42 = vmul.f32 %v1815_v2, %v1128_v13 }
 0x485   :  { %v1166_v36 = vsel %vm1165_vm0, %v1157_v42, 0.0 }
 0x486   :  { %1167 = vadd.xlane.f32.xlu2 %v1166_v36 }
 0x48a   :  { %v1131_v40 = vpop.f32.mrf.mxu3 }
 0x48b   :  { %v1158_v3 = vmul.f32 %v1815_v2, %v1131_v40 }
 0x48d   :  { %v1169_v38 = vsel %vm1165_vm0, %v1158_v3, 0.0 }
 0x48e   :  { %1170 = vadd.xlane.f32.xlu1 %v1169_v38 }
 0x493   :  { %v1134_v21 = vpop.f32.mrf.mxu3 }
 0x494   :  { %v1159_v60 = vmul.f32 %v1815_v2, %v1134_v21 }
 0x496   :  { %v1172_v6 = vsel %vm1165_vm0, %v1159_v60, 0.0 }
 0x497   :  { %1173 = vadd.xlane.f32.xlu0 %v1172_v6 }
 0x49b   :  { %v1137_v43 = vpop.f32.mrf.mxu3 }
 0x49c   :  { %v1160_v15 = vmul.f32 %v1815_v2, %v1137_v43 }
 0x49e   :  { %v1175_v22 = vsel %vm1165_vm0, %v1160_v15, 0.0 }
 0x49f   :  { %1176 = vadd.xlane.f32.xlu2 %v1175_v22 }
 0x4a3   :  { %v1140_v16 = vpop.f32.mrf.mxu3 }
 0x4a4   :  { %v1161_v61 = vmul.f32 %v1815_v2, %v1140_v16 }
 0x4a6   :  { %v1178_v59 = vsel %vm1165_vm0, %v1161_v61, 0.0 }
 0x4a7   :  { %1179 = vadd.xlane.f32.xlu1 %v1178_v59 }
 0x4ab   :  { %v1143_v44 = vpop.f32.mrf.mxu3 }
 0x4ac   :  { %v1162_v63 = vmul.f32 %v1815_v2, %v1143_v44 }
 0x4ae   :  { %v1181_v23 = vsel %vm1165_vm0, %v1162_v63, 0.0 }
 0x4af   :  { %1182 = vadd.xlane.f32.xlu0 %v1181_v23 }
 0x4b3   :  { %v1146_v33 = vpop.f32.mrf.mxu3 }
 0x4b4   :  { %v1163_v25 = vmul.f32 %v1815_v2, %v1146_v33 }
 0x4b6   :  { %v1184_v27 = vsel %vm1165_vm0, %v1163_v25, 0.0 }
 0x4b7   :  { %1185 = vadd.xlane.f32.xlu1 %v1184_v27 }
 0x4bb   :  { %v1149_v56 = vpop.f32.mrf.mxu3 }
 0x4bc   :  { %v2697_v34 = vmul.f32 %v1815_v2, %v1149_v56  ;;  %1759 = vmatpush.xpose.msk.msra.mxu0 %vm1165_vm0, %v1149_v56  ;;  %1502 = vmatpush.msrb.mxu2 %v1149_v56 }
 0x4be   :  { %1503 = vmatpush.msrb.mxu2 %v1146_v33 }
 0x4c0   :  { %1760 = vmatpush.xpose.msk.msra.mxu0 %vm1165_vm0, %v1146_v33  ;;  %1504 = vmatpush.msrb.mxu2 %v1143_v44 }
 0x4c2   :  { %1505 = vmatpush.msrb.mxu2 %v1140_v16 }
 0x4c4   :  { %1761 = vmatpush.xpose.msk.msra.mxu0 %vm1165_vm0, %v1143_v44  ;;  %1506 = vmatpush.msrb.mxu2 %v1137_v43 }
 0x4c6   :  { %1507 = vmatpush.msrb.mxu2 %v1134_v21 }
 0x4c8   :  { %1762 = vmatpush.xpose.msk.msra.mxu0 %vm1165_vm0, %v1140_v16  ;;  %1508 = vmatpush.msrb.mxu2 %v1131_v40 }
 0x4ca   :  { %1509 = vmatpush.msrb.mxu2 %v1128_v13 }
 0x4cc   :  { %1763 = vmatpush.xpose.msk.msra.mxu0 %vm1165_vm0, %v1137_v43 }
 0x4d0   :  { %1764 = vmatpush.xpose.msk.msra.mxu0 %vm1165_vm0, %v1134_v21 }
 0x4d4   :  { %1765 = vmatpush.xpose.msk.msra.mxu0 %vm1165_vm0, %v1131_v40  ;;  %v1187_v40 = vsel %vm1165_vm0, %v2697_v34, 0.0 }
 0x4d8   :  { %1766 = vmatpush.xpose.msk.msra.mxu0 %vm1165_vm0, %v1128_v13 }
 0x4db   :  { %1767 = vmatmul.msk.f32.vlgmr.msra.gmra.mxu0 %vm1165_vm0, %v1153_v52 }
 0x4f9   :  { %v1168_v53 = vpop.xlane.xlu2 %1167 }
 0x501   :  { %v1171_v19 = vpop.xlane.xlu1 %1170 }
 0x50a   :  { %v1174_v41 = vpop.xlane.xlu0 %1173 }
 0x512   :  { %v1177_v48 = vpop.xlane.xlu2 %1176 }
 0x51a   :  { %v1180_v46 = vpop.xlane.xlu1 %1179 }
 0x522   :  { %v1183_v49 = vpop.xlane.xlu0 %1182 }
 0x52a   :  { %v1186_v39 = vpop.xlane.xlu1 %1185 }
 0x558   :  { %v1234_v45 = vpop.f32.mrf.mxu0 }
 0x559   :  { %v2711_v37 = vperm.slane %v1234_v45, 0 }
 0x55b   :  { %v1240_v17 = vadd.f32 %v2711_v37, %v1174_v41  ;;  %v1239_v5 = vadd.f32 %v2711_v37, %v1171_v19  ;;  %v1238_v30 = vadd.f32 %v2711_v37, %v1168_v53  ;;  %v1243_v29 = vadd.f32 %v2711_v37, %v1183_v49 }
 0x55c   :  { %v1241_v35 = vadd.f32 %v2711_v37, %v1177_v48  ;;  %v1244_v26 = vadd.f32 %v2711_v37, %v1186_v39  ;;  %v1242_v55 = vadd.f32 %v2711_v37, %v1180_v46 }
 0x55d   :  { %vm1248_vm15 = vcmp.gt.f32.partialorder %v1240_v17, 0.0  ;;  %v1256_v50 = vmul.f32 0.1, %v1240_v17  ;;  %vm1247_vm4 = vcmp.gt.f32.partialorder %v1239_v5, 0.0  ;;  %v1255_v54 = vmul.f32 0.1, %v1239_v5 }
 0x55e   :  { %vm1246_vm7 = vcmp.gt.f32.partialorder %v1238_v30, 0.0  ;;  %v1254_v58 = vmul.f32 0.1, %v1238_v30  ;;  %vm1251_vm8 = vcmp.gt.f32.partialorder %v1243_v29, 0.0  ;;  %v1259_v1 = vmul.f32 0.1, %v1243_v29 }
 0x55f   :  { %v1264_v62 = vsel %vm1248_vm15, %v1240_v17, %v1256_v50  ;;  %v1263_v0 = vsel %vm1247_vm4, %v1239_v5, %v1255_v54  ;;  %v1257_v4 = vmul.f32 0.1, %v1241_v35  ;;  %vm1249_vm2 = vcmp.gt.f32.partialorder %v1241_v35, 0.0 }
 0x560   :  { %v1272_v47 = vsel %vm2262_vm11, %v1264_v62, -9e+15  ;;  %v1271_v14 = vsel %vm2228_vm5, %v1263_v0, -9e+15  ;;  %v1262_v7 = vsel %vm1246_vm7, %v1238_v30, %v1254_v58  ;;  %v1267_v51 = vsel %vm1251_vm8, %v1243_v29, %v1259_v1 }
 0x561   :  { %v1284_v9 = vsel %vm254_vm3, %v1272_v47, -inf  ;;  %v1281_v11 = vsel %vm254_vm3, %v1271_v14, -inf  ;;  %v1270_v20 = vsel %vm2212_vm1, %v1262_v7, -9e+15  ;;  %v1265_v28 = vsel %vm1249_vm2, %v1241_v35, %v1257_v4 }
 0x562   :  { %1285 = vmax.xlane.f32.xlu1 %v1284_v9  ;;  %1282 = vmax.xlane.f32.xlu0 %v1281_v11  ;;  %v1278_v12 = vsel %vm254_vm3, %v1270_v20, -inf  ;;  %v1275_v18 = vsel %vm2269_vm12, %v1267_v51, -9e+15  ;;  %v1273_v10 = vsel %vm2235_vm6, %v1265_v28, -9e+15  ;;  %vm1252_vm1 = vcmp.gt.f32.partialorder %v1244_v26, 0.0 }
 0x563   :  { %1279 = vmax.xlane.f32.xlu2 %v1278_v12  ;;  %v1260_v2 = vmul.f32 0.1, %v1244_v26  ;;  %v1258_v13 = vmul.f32 0.1, %v1242_v55  ;;  %v1293_v42 = vsel %vm254_vm3, %v1275_v18, -inf  ;;  %v1287_v36 = vsel %vm254_vm3, %v1273_v10, -inf }
 0x564   :  { %vm1250_vm5 = vcmp.gt.f32.partialorder %v1242_v55, 0.0  ;;  %vm2938_vm11 = vnez %v2915_v8  ;;  %vm2939_vm6 = vnez %v2909_v32 }
 0x565   :  { %v1268_v3 = vsel %vm1252_vm1, %v1244_v26, %v1260_v2  ;;  %v1266_v57 = vsel %vm1250_vm5, %v1242_v55, %v1258_v13 }
 0x566   :  { %v1276_v31 = vsel %vm2938_vm11, %v1268_v3, -9e+15  ;;  %v1274_v38 = vsel %vm2939_vm6, %v1266_v57, -9e+15 }
 0x567   :  { %v1296_v21 = vsel %vm254_vm3, %v1276_v31, -inf  ;;  %v1290_v60 = vsel %vm254_vm3, %v1274_v38, -inf }
 0x56a   :  { %1294 = vmax.xlane.f32.xlu1 %v1293_v42  ;;  %1288 = vmax.xlane.f32.xlu0 %v1287_v36 }
 0x56b   :  { %1188 = vadd.xlane.f32.xlu2 %v1187_v40 }
 0x572   :  { %1297 = vmax.xlane.f32.xlu0 %v1296_v21 }
 0x573   :  { %1291 = vmax.xlane.f32.xlu2 %v1290_v60 }
 0x5d5   :  { %v1286_v6 = vpop.xlane.xlu1 %1285  ;;  %v1283_v43 = vpop.xlane.xlu0 %1282 }
 0x5d6   :  { %v1303_v15 = vsub.f32 %v1271_v14, %v1283_v43  ;;  %v1280_v22 = vpop.xlane.xlu2 %1279  ;;  %v1304_v44 = vsub.f32 %v1272_v47, %v1286_v6 }
 0x5d7   :  { %v1302_v16 = vsub.f32 %v1270_v20, %v1280_v22 }
 0x5d8   :  { %v1312_v61 = vmul.f32 1.442695, %v1303_v15  ;;  %v1314_v63 = vmul.f32 1.442695, %v1304_v44 }
 0x5d9   :  { %v1310_v59 = vmul.f32 1.442695, %v1302_v16 }
 0x5da   :  { %1912 = vpow2.f32 %v1312_v61 }
 0x5db   :  { %1914 = vpow2.f32 %v1310_v59 }
 0x5dc   :  { %1916 = vpow2.f32 %v1314_v63 }
 0x5dd   :  { %v1289_v8 = vpop.xlane.xlu0 %1288  ;;  %v1295_v33 = vpop.xlane.xlu1 %1294 }
 0x5de   :  { %v1305_v32 = vsub.f32 %v1273_v10, %v1289_v8  ;;  %v1189_v23 = vpop.xlane.xlu2 %1188  ;;  %v1307_v19 = vsub.f32 %v1275_v18, %v1295_v33 }
 0x5df   :  { %v1245_v25 = vadd.f32 %v2711_v37, %v1189_v23 }
 0x5e0   :  { %v1316_v27 = vmul.f32 1.442695, %v1305_v32  ;;  %v2745_v56 = vpop.eup %1912  ;;  %v1320_v48 = vmul.f32 1.442695, %v1307_v19 }
 0x5e1   :  { %v1261_v34 = vmul.f32 0.1, %v1245_v25  ;;  %vm1253_vm12 = vcmp.gt.f32.partialorder %v1245_v25, 0.0  ;;  %v2747_v52 = vpop.eup %1914  ;;  %v1329_v41 = vsel %vm254_vm3, %v2745_v56, 0.0 }
 0x5e2   :  { %1330 = vadd.xlane.f32.xlu0 %v1329_v41  ;;  %v1326_v53 = vsel %vm254_vm3, %v2747_v52, 0.0  ;;  %1918 = vpow2.f32 %v1316_v27  ;;  %v2756_v29 = vpop.eup %1916 }
 0x5e3   :  { %v1269_v45 = vsel %vm1253_vm12, %v1245_v25, %v1261_v34  ;;  %1327 = vadd.xlane.f32.xlu2 %v1326_v53  ;;  %1920 = vpow2.f32 %v1320_v48  ;;  %v1332_v24 = vsel %vm254_vm3, %v2756_v29, 0.0 }
 0x5e4   :  { %v1277_v37 = vsel %vm2940_vm10, %v1269_v45, -9e+15 }
 0x5e5   :  { %v1298_v46 = vpop.xlane.xlu0 %1297  ;;  %v1299_v49 = vsel %vm254_vm3, %v1277_v37, -inf }
 0x5e6   :  { %v1308_v17 = vsub.f32 %v1276_v31, %v1298_v46  ;;  %1300 = vmax.xlane.f32.xlu1 %v1299_v49  ;;  %v1292_v5 = vpop.xlane.xlu2 %1291 }
 0x5e7   :  { %v1306_v30 = vsub.f32 %v1274_v38, %v1292_v5 }
 0x5e8   :  { %v1322_v35 = vmul.f32 1.442695, %v1308_v17  ;;  %v2758_v54 = vpop.eup %1918 }
 0x5e9   :  { %v1318_v50 = vmul.f32 1.442695, %v1306_v30  ;;  %v1335_v58 = vsel %vm254_vm3, %v2758_v54, 0.0  ;;  %v2764_v62 = vpop.eup %1920 }
 0x5ea   :  { %v1341_v47 = vsel %vm254_vm3, %v2764_v62, 0.0 }
 0x5eb   :  { %1922 = vpow2.f32 %v1318_v50  ;;  %1333 = vadd.xlane.f32.xlu2 %v1332_v24 }
 0x5ec   :  { %1924 = vpow2.f32 %v1322_v35 }
 0x5ee   :  { %1336 = vadd.xlane.f32.xlu1 %v1335_v58 }
 0x5f1   :  { %v2766_v0 = vpop.eup %1922 }
 0x5f2   :  { %v2768_v1 = vpop.eup %1924  ;;  %v1338_v4 = vsel %vm254_vm3, %v2766_v0, 0.0 }
 0x5f3   :  { %1339 = vadd.xlane.f32.xlu0 %v1338_v4  ;;  %1342 = vadd.xlane.f32.xlu2 %v1341_v47  ;;  %v1344_v14 = vsel %vm254_vm3, %v2768_v1, 0.0 }
 0x5f6   :  { %1345 = vadd.xlane.f32.xlu1 %v1344_v14 }
 0x655   :  { %v1331_v7 = vpop.xlane.xlu0 %1330 }
 0x656   :  { %1926 = vrcp.f32 %v1331_v7  ;;  %v1328_v9 = vpop.xlane.xlu2 %1327  ;;  %v1375_v59 = vand.u32 2147483648, %v1331_v7  ;;  %vm1369_vm7 = vweird.f32 %v1331_v7  ;;  %v1373_v8 = vand.u32 2147483647, %v1331_v7 }
 0x657   :  { %1928 = vrcp.f32 %v1328_v9  ;;  %v1361_v42 = vand.u32 2147483648, %v1328_v9  ;;  %v1359_v40 = vand.u32 2147483647, %v1328_v9  ;;  %vm1355_vm14 = vweird.f32 %v1328_v9 }
 0x658   :  { %v1376_v33 = vor.u32 1.1754944e-38, %v1375_v59  ;;  %vm1374_vm2 = vcmp.eq.f32.partialorder %v1373_v8, 8.507059e+37 }
 0x659   :  { %v1301_v11 = vpop.xlane.xlu1 %1300  ;;  %v1362_v21 = vor.u32 1.1754944e-38, %v1361_v42  ;;  %vm1360_vm15 = vcmp.eq.f32.partialorder %v1359_v40, 8.507059e+37 }
 0x65a   :  { %v1309_v20 = vsub.f32 %v1277_v37, %v1301_v11 }
 0x65c   :  { %v1324_v39 = vmul.f32 1.442695, %v1309_v20  ;;  %v1927_v12 = vpop.eup %1926 }
 0x65d   :  { %v1929_v51 = vpop.eup %1928  ;;  %v1365_v28 = vmul.f32 %v1927_v12, %v1331_v7  ;;  %vm1370_vm4 = vweird.f32 %v1927_v12 }
 0x65e   :  { %1930 = vpow2.f32 %v1324_v39  ;;  %v1351_v26 = vmul.f32 %v1929_v51, %v1328_v9  ;;  %v1334_v55 = vpop.xlane.xlu2 %1333  ;;  %vm1356_vm13 = vweird.f32 %v1929_v51  ;;  %vm1371_vm8 = vmor %vm1369_vm7, %vm1370_vm4 }
 0x65f   :  { %1932 = vrcp.f32 %v1334_v55  ;;  %v1366_v18 = vsub.f32 1.0, %v1365_v28  ;;  %vm1357_vm9 = vmor %vm1355_vm14, %vm1356_vm13  ;;  %vm1383_vm5 = vweird.f32 %v1334_v55  ;;  %v1387_v45 = vand.u32 2147483647, %v1334_v55 }
 0x660   :  { %v1352_v10 = vsub.f32 1.0, %v1351_v26 }
 0x661   :  { %v2776_v2 = vpop.xlane.xlu1 %1336  ;;  %v1367_v3 = vmul.f32 %v1927_v12, %v1366_v18  ;;  %vm1388_vm6 = vcmp.eq.f32.partialorder %v1387_v45, 8.507059e+37 }
 0x662   :  { %v1353_v13 = vmul.f32 %v1929_v51, %v1352_v10  ;;  %1934 = vrcp.f32 %v2776_v2  ;;  %vm1397_vm10 = vweird.f32 %v2776_v2  ;;  %v1401_v58 = vand.u32 2147483647, %v2776_v2 }
 0x663   :  { %v1368_v16 = vadd.f32 %v1927_v12, %v1367_v3 }
 0x664   :  { %v2778_v36 = vpop.eup %1930  ;;  %v1354_v57 = vadd.f32 %v1929_v51, %v1353_v13  ;;  %vm1402_vm14 = vcmp.eq.f32.partialorder %v1401_v58, 8.507059e+37 }
 0x665   :  { %v1347_v31 = vsel %vm254_vm3, %v2778_v36, 0.0  ;;  %v1933_v38 = vpop.eup %1932  ;;  %v1372_v23 = vsel %vm1371_vm8, %v1927_v12, %v1368_v16 }
 0x666   :  { %1348 = vadd.xlane.f32.xlu0 %v1347_v31  ;;  %v1379_v60 = vmul.f32 %v1933_v38, %v1334_v55  ;;  %v1358_v6 = vsel %vm1357_vm9, %v1929_v51, %v1354_v57  ;;  %v2783_v15 = vpop.xlane.xlu0 %1339  ;;  %v1377_v25 = vsel %vm1374_vm2, %v1376_v33, %v1372_v23  ;;  %v2789_v34 = vpop.xlane.xlu2 %1342  ;;  %vm1384_vm1 = vweird.f32 %v1933_v38 }
 0x667   :  { %v1363_v22 = vsel %vm1360_vm15, %v1362_v21, %v1358_v6  ;;  %1936 = vrcp.f32 %v2783_v15  ;;  %v1463_v53 = vmul.f32 %v2745_v56, %v1377_v25  ;;  %vm1385_vm11 = vmor %vm1383_vm5, %vm1384_vm1  ;;  %v1403_v56 = vand.u32 2147483648, %v2776_v2 }
 0x668   :  { %v1380_v43 = vsub.f32 1.0, %v1379_v60  ;;  %v1935_v61 = vpop.eup %1934  ;;  %v1462_v44 = vmul.f32 %v2747_v52, %v1363_v22  ;;  %v1389_v52 = vand.u32 2147483648, %v1334_v55  ;;  %1938 = vrcp.f32 %v2789_v34 }
 0x669   :  { %v1393_v32 = vmul.f32 %v1935_v61, %v2776_v2  ;;  %v1346_v30 = vpop.xlane.xlu1 %1345  ;;  %vm1398_vm12 = vweird.f32 %v1935_v61  ;;  %v1404_v7 = vor.u32 1.1754944e-38, %v1403_v56  ;;  %v1417_v12 = vand.u32 2147483648, %v2783_v15 }
 0x66a   :  { %v1381_v63 = vmul.f32 %v1933_v38, %v1380_v43  ;;  %1768 = vmatmul.msk.f32.vlgmr.msrb.gmra.mxu2 %vm254_vm3, %v1462_v44  ;;  %v1390_v48 = vor.u32 1.1754944e-38, %v1389_v52  ;;  %1940 = vrcp.f32 %v1346_v30  ;;  %vm1399_vm13 = vmor %vm1397_vm10, %vm1398_vm12  ;;  %vm1411_vm15 = vweird.f32 %v2783_v15 }
 0x66b   :  { %v1394_v27 = vsub.f32 1.0, %v1393_v32  ;;  %v1415_v51 = vand.u32 2147483647, %v2783_v15  ;;  %v1418_v18 = vor.u32 1.1754944e-38, %v1417_v12  ;;  %v1431_v42 = vand.u32 2147483648, %v2789_v34 }
 0x66c   :  { %v1382_v19 = vadd.f32 %v1933_v38, %v1381_v63  ;;  %vm1425_vm2 = vweird.f32 %v2789_v34  ;;  %v1429_v40 = vand.u32 2147483647, %v2789_v34  ;;  %v1445_v60 = vand.u32 2147483648, %v1346_v30 }
 0x66d   :  { %v1937_v41 = vpop.eup %1936  ;;  %v1395_v37 = vmul.f32 %v1935_v61, %v1394_v27  ;;  %vm1416_vm7 = vcmp.eq.f32.partialorder %v1415_v51, 8.507059e+37  ;;  %v1432_v31 = vor.u32 1.1754944e-38, %v1431_v42  ;;  %v1443_v43 = vand.u32 2147483647, %v1346_v30 }
 0x66e   :  { %v1407_v46 = vmul.f32 %v1937_v41, %v2783_v15  ;;  %v1386_v49 = vsel %vm1385_vm11, %v1933_v38, %v1382_v19  ;;  %v1939_v50 = vpop.eup %1938  ;;  %vm1412_vm9 = vweird.f32 %v1937_v41  ;;  %vm1430_vm5 = vcmp.eq.f32.partialorder %v1429_v40, 8.507059e+37 }
 0x66f   :  { %v1391_v17 = vsel %vm1388_vm6, %v1390_v48, %v1386_v49  ;;  %v1396_v35 = vadd.f32 %v1935_v61, %v1395_v37  ;;  %v1421_v47 = vmul.f32 %v1939_v50, %v2789_v34  ;;  %vm1413_vm4 = vmor %vm1411_vm15, %vm1412_vm9  ;;  %vm1426_vm8 = vweird.f32 %v1939_v50 }
 0x670   :  { %v1408_v5 = vsub.f32 1.0, %v1407_v46  ;;  %v1464_v24 = vmul.f32 %v2756_v29, %v1391_v17  ;;  %v1941_v39 = vpop.eup %1940  ;;  %vm1427_vm1 = vmor %vm1425_vm2, %vm1426_vm8  ;;  %vm1439_vm6 = vweird.f32 %v1346_v30  ;;  %v1446_v15 = vor.u32 1.1754944e-38, %v1445_v60 }
 0x671   :  { %v1400_v14 = vsel %vm1399_vm13, %v1935_v61, %v1396_v35  ;;  %v1422_v11 = vsub.f32 1.0, %v1421_v47  ;;  %v1435_v26 = vmul.f32 %v1941_v39, %v1346_v30  ;;  %vm1440_vm11 = vweird.f32 %v1941_v39 }
 0x672   :  { %1769 = vmatmul.msk.f32.gmra.mxu2 %vm254_vm3, %v1463_v53  ;;  %v1409_v4 = vmul.f32 %v1937_v41, %v1408_v5  ;;  %v1405_v9 = vsel %vm1402_vm14, %v1404_v7, %v1400_v14  ;;  %vm1441_vm12 = vmor %vm1439_vm6, %vm1440_vm11  ;;  %vm1444_vm10 = vcmp.eq.f32.partialorder %v1443_v43, 8.507059e+37 }
 0x673   :  { %v1465_v29 = vmul.f32 %v2758_v54, %v1405_v9  ;;  %v1423_v28 = vmul.f32 %v1939_v50, %v1422_v11  ;;  %v1436_v2 = vsub.f32 1.0, %v1435_v26 }
 0x674   :  { %v1410_v20 = vadd.f32 %v1937_v41, %v1409_v4 }
 0x675   :  { %v1424_v13 = vadd.f32 %v1939_v50, %v1423_v28  ;;  %v1437_v3 = vmul.f32 %v1941_v39, %v1436_v2 }
 0x676   :  { %v1414_v55 = vsel %vm1413_vm4, %v1937_v41, %v1410_v20 }
 0x677   :  { %v1419_v10 = vsel %vm1416_vm7, %v1418_v18, %v1414_v55  ;;  %v1428_v57 = vsel %vm1427_vm1, %v1939_v50, %v1424_v13  ;;  %v1438_v21 = vadd.f32 %v1941_v39, %v1437_v3 }
 0x678   :  { %v1466_v54 = vmul.f32 %v2766_v0, %v1419_v10  ;;  %v1433_v38 = vsel %vm1430_vm5, %v1432_v31, %v1428_v57 }
 0x679   :  { %v1467_v6 = vmul.f32 %v2764_v62, %v1433_v38  ;;  %v1442_v0 = vsel %vm1441_vm12, %v1941_v39, %v1438_v21 }
 0x67a   :  { %1770 = vmatmul.msk.f32.gmra.mxu2 %vm254_vm3, %v1464_v24  ;;  %v1447_v22 = vsel %vm1444_vm10, %v1446_v15, %v1442_v0 }
 0x67b   :  { %v1468_v16 = vmul.f32 %v2768_v1, %v1447_v22 }
 0x682   :  { %1771 = vmatmul.msk.f32.gmra.mxu2 %vm254_vm3, %v1465_v29 }
 0x68a   :  { %1772 = vmatmul.msk.f32.gmra.mxu2 %vm254_vm3, %v1466_v54 }
 0x692   :  { %1773 = vmatmul.msk.f32.gmra.mxu2 %vm254_vm3, %v1467_v6 }
 0x69a   :  { %1774 = vmatmul.msk.f32.gmra.mxu2 %vm254_vm3, %v1468_v16 }
 0x6d9   :  { %v1349_v61 = vpop.xlane.xlu0 %1348 }
 0x6da   :  { %1942 = vrcp.f32 %v1349_v61  ;;  %v1459_v63 = vand.u32 2147483648, %v1349_v61  ;;  %v1457_v62 = vand.u32 2147483647, %v1349_v61  ;;  %vm1453_vm14 = vweird.f32 %v1349_v61 }
 0x6dc   :  { %v1460_v33 = vor.u32 1.1754944e-38, %v1459_v63  ;;  %vm1458_vm15 = vcmp.eq.f32.partialorder %v1457_v62, 8.507059e+37 }
 0x6e0   :  { %v1943_v59 = vpop.eup %1942 }
 0x6e1   :  { %v1449_v44 = vmul.f32 %v1943_v59, %v1349_v61  ;;  %vm1454_vm13 = vweird.f32 %v1943_v59 }
 0x6e2   :  { %vm1455_vm9 = vmor %vm1453_vm14, %vm1454_vm13 }
 0x6e3   :  { %v1450_v8 = vsub.f32 1.0, %v1449_v44 }
 0x6e5   :  { %v1451_v32 = vmul.f32 %v1943_v59, %v1450_v8 }
 0x6e7   :  { %v1452_v23 = vadd.f32 %v1943_v59, %v1451_v32 }
 0x6e9   :  { %v1456_v25 = vsel %vm1455_vm9, %v1943_v59, %v1452_v23 }
 0x6ea   :  { %v1461_v27 = vsel %vm1458_vm15, %v1460_v33, %v1456_v25 }
 0x6eb   :  { %v1469_v1 = vmul.f32 %v2778_v36, %v1461_v27 }
 0x6ed   :  { %1775 = vmatmul.msk.f32.gmra.mxu2 %vm254_vm3, %v1469_v1  ;;  %v1511_v34 = vpop.f32.mrf.mxu2 }
 0x6ee   :  { %v1543_v19 = vmin.f32 %v1511_v34, 0.0  ;;  %vm1535_vm4 = vcmp.gt.f32.partialorder %v1511_v34, 0.0 }
 0x6f0   :  { %v1551_v41 = vmul.f32 1.442695, %v1543_v19 }
 0x6f2   :  { %1944 = vpow2.f32 %v1551_v41 }
 0x6f5   :  { %v1514_v52 = vpop.f32.mrf.mxu2 }
 0x6f6   :  { %v1544_v53 = vmin.f32 %v1514_v52, 0.0  ;;  %vm1536_vm3 = vcmp.gt.f32.partialorder %v1514_v52, 0.0 }
 0x6f8   :  { %v1945_v45 = vpop.eup %1944  ;;  %v1553_v37 = vmul.f32 1.442695, %v1544_v53 }
 0x6f9   :  { %v1776_v46 = vadd.f32 -1.0, %v1945_v45 }
 0x6fa   :  { %1946 = vpow2.f32 %v1553_v37 }
 0x6fb   :  { %v2817_v49 = vsel %vm1535_vm4, %v1511_v34, %v1776_v46 }
 0x6fc   :  { %v1583_v48 = vsel %vm1165_vm0, %v2817_v49, -inf }
 0x6fd   :  { %1584 = vmax.xlane.f32.xlu2 %v1583_v48  ;;  %v1517_v36 = vpop.f32.mrf.mxu2 }
 0x6fe   :  { %v1545_v17 = vmin.f32 %v1517_v36, 0.0  ;;  %vm1537_vm7 = vcmp.gt.f32.partialorder %v1517_v36, 0.0 }
 0x700   :  { %v1947_v5 = vpop.eup %1946  ;;  %v1555_v30 = vmul.f32 1.442695, %v1545_v17 }
 0x701   :  { %v1777_v35 = vadd.f32 -1.0, %v1947_v5 }
 0x702   :  { %1948 = vpow2.f32 %v1555_v30 }
 0x703   :  { %v1576_v50 = vsel %vm1536_vm3, %v1514_v52, %v1777_v35 }
 0x704   :  { %v1586_v56 = vsel %vm1165_vm0, %v1576_v50, -inf }
 0x705   :  { %1587 = vmax.xlane.f32.xlu1 %v1586_v56  ;;  %v1520_v24 = vpop.f32.mrf.mxu2 }
 0x706   :  { %v1546_v58 = vmin.f32 %v1520_v24, 0.0  ;;  %vm1538_vm8 = vcmp.gt.f32.partialorder %v1520_v24, 0.0 }
 0x708   :  { %v1949_v4 = vpop.eup %1948  ;;  %v1557_v47 = vmul.f32 1.442695, %v1546_v58 }
 0x709   :  { %v1778_v14 = vadd.f32 -1.0, %v1949_v4 }
 0x70a   :  { %1950 = vpow2.f32 %v1557_v47 }
 0x70b   :  { %v1577_v7 = vsel %vm1537_vm7, %v1517_v36, %v1778_v14 }
 0x70c   :  { %v1589_v9 = vsel %vm1165_vm0, %v1577_v7, -inf }
 0x70d   :  { %1590 = vmax.xlane.f32.xlu0 %v1589_v9  ;;  %v1523_v11 = vpop.f32.mrf.mxu2 }
 0x70e   :  { %v1547_v20 = vmin.f32 %v1523_v11, 0.0  ;;  %vm1539_vm2 = vcmp.gt.f32.partialorder %v1523_v11, 0.0 }
 0x710   :  { %v1951_v39 = vpop.eup %1950  ;;  %v1559_v12 = vmul.f32 1.442695, %v1547_v20 }
 0x711   :  { %v1779_v29 = vadd.f32 -1.0, %v1951_v39 }
 0x712   :  { %1952 = vpow2.f32 %v1559_v12 }
 0x713   :  { %v1578_v51 = vsel %vm1538_vm8, %v1520_v24, %v1779_v29 }
 0x714   :  { %v1592_v28 = vsel %vm1165_vm0, %v1578_v51, -inf }
 0x715   :  { %1593 = vmax.xlane.f32.xlu2 %v1592_v28  ;;  %v1526_v26 = vpop.f32.mrf.mxu2 }
 0x716   :  { %v1548_v55 = vmin.f32 %v1526_v26, 0.0  ;;  %vm1540_vm1 = vcmp.gt.f32.partialorder %v1526_v26, 0.0 }
 0x718   :  { %v1953_v18 = vpop.eup %1952  ;;  %v1561_v10 = vmul.f32 1.442695, %v1548_v55 }
 0x719   :  { %v1780_v2 = vadd.f32 -1.0, %v1953_v18 }
 0x71a   :  { %1954 = vpow2.f32 %v1561_v10 }
 0x71b   :  { %v1579_v13 = vsel %vm1539_vm2, %v1523_v11, %v1780_v2 }
 0x71c   :  { %v1595_v42 = vsel %vm1165_vm0, %v1579_v13, -inf }
 0x71d   :  { %1596 = vmax.xlane.f32.xlu1 %v1595_v42  ;;  %v1529_v54 = vpop.f32.mrf.mxu2 }
 0x71e   :  { %v1549_v40 = vmin.f32 %v1529_v54, 0.0  ;;  %vm1541_vm5 = vcmp.gt.f32.partialorder %v1529_v54, 0.0 }
 0x720   :  { %v1955_v3 = vpop.eup %1954  ;;  %v1563_v57 = vmul.f32 1.442695, %v1549_v40 }
 0x721   :  { %v1781_v31 = vadd.f32 -1.0, %v1955_v3 }
 0x722   :  { %1956 = vpow2.f32 %v1563_v57 }
 0x723   :  { %v1580_v38 = vsel %vm1540_vm1, %v1526_v26, %v1781_v31 }
 0x724   :  { %v1598_v21 = vsel %vm1165_vm0, %v1580_v38, -inf }
 0x725   :  { %1599 = vmax.xlane.f32.xlu0 %v1598_v21 }
 0x728   :  { %v1957_v60 = vpop.eup %1956 }
 0x729   :  { %v1782_v6 = vadd.f32 -1.0, %v1957_v60 }
 0x72b   :  { %v1581_v43 = vsel %vm1541_vm5, %v1529_v54, %v1782_v6 }
 0x72c   :  { %v1601_v0 = vsel %vm1165_vm0, %v1581_v43, -inf }
 0x72d   :  { %1602 = vmax.xlane.f32.xlu2 %v1601_v0 }
 0x770   :  { %v1532_v15 = vpop.f32.mrf.mxu2  ;;  %v1585_v61 = vpop.xlane.xlu2 %1584 }
 0x771   :  { %v1550_v22 = vmin.f32 %v1532_v15, 0.0  ;;  %v2828_v59 = vsub.f32 %v2817_v49, %v1585_v61  ;;  %vm1542_vm11 = vcmp.gt.f32.partialorder %v1532_v15, 0.0 }
 0x773   :  { %v1565_v16 = vmul.f32 1.442695, %v1550_v22  ;;  %v1615_v44 = vmul.f32 1.442695, %v2828_v59 }
 0x775   :  { %1958 = vpow2.f32 %v1565_v16 }
 0x776   :  { %1960 = vpow2.f32 %v1615_v44 }
 0x778   :  { %v1588_v63 = vpop.xlane.xlu1 %1587 }
 0x779   :  { %v2831_v62 = vsub.f32 %v1576_v50, %v1588_v63 }
 0x77b   :  { %v1959_v8 = vpop.eup %1958  ;;  %v1617_v33 = vmul.f32 1.442695, %v2831_v62 }
 0x77c   :  { %v1783_v32 = vadd.f32 -1.0, %v1959_v8  ;;  %v1961_v23 = vpop.eup %1960 }
 0x77d   :  { %v1631_v27 = vsel %vm1165_vm0, %v1961_v23, 0.0  ;;  %1962 = vpow2.f32 %v1617_v33 }
 0x77e   :  { %v1582_v25 = vsel %vm1542_vm11, %v1532_v15, %v1783_v32  ;;  %1632 = vadd.xlane.f32.xlu0 %v1631_v27 }
 0x77f   :  { %v1604_v1 = vsel %vm1165_vm0, %v1582_v25, -inf }
 0x780   :  { %1605 = vmax.xlane.f32.xlu1 %v1604_v1  ;;  %v1591_v34 = vpop.xlane.xlu0 %1590 }
 0x781   :  { %v2836_v19 = vsub.f32 %v1577_v7, %v1591_v34 }
 0x783   :  { %v1963_v41 = vpop.eup %1962  ;;  %v1619_v52 = vmul.f32 1.442695, %v2836_v19 }
 0x784   :  { %v1634_v53 = vsel %vm1165_vm0, %v1963_v41, 0.0 }
 0x785   :  { %1964 = vpow2.f32 %v1619_v52  ;;  %1635 = vadd.xlane.f32.xlu2 %v1634_v53 }
 0x788   :  { %v1594_v45 = vpop.xlane.xlu2 %1593 }
 0x789   :  { %v2840_v37 = vsub.f32 %v1578_v51, %v1594_v45 }
 0x78b   :  { %v1965_v46 = vpop.eup %1964  ;;  %v1621_v49 = vmul.f32 1.442695, %v2840_v37 }
 0x78c   :  { %v1637_v48 = vsel %vm1165_vm0, %v1965_v46, 0.0 }
 0x78d   :  { %1966 = vpow2.f32 %v1621_v49  ;;  %1638 = vadd.xlane.f32.xlu1 %v1637_v48 }
 0x790   :  { %v1597_v36 = vpop.xlane.xlu1 %1596 }
 0x791   :  { %v2844_v17 = vsub.f32 %v1579_v13, %v1597_v36 }
 0x793   :  { %v1967_v5 = vpop.eup %1966  ;;  %v1623_v30 = vmul.f32 1.442695, %v2844_v17 }
 0x794   :  { %v1640_v35 = vsel %vm1165_vm0, %v1967_v5, 0.0 }
 0x795   :  { %1968 = vpow2.f32 %v1623_v30  ;;  %1641 = vadd.xlane.f32.xlu0 %v1640_v35 }
 0x798   :  { %v1600_v50 = vpop.xlane.xlu0 %1599 }
 0x799   :  { %v1612_v56 = vsub.f32 %v1580_v38, %v1600_v50 }
 0x79b   :  { %v1969_v24 = vpop.eup %1968  ;;  %v1625_v58 = vmul.f32 1.442695, %v1612_v56 }
 0x79c   :  { %v1643_v4 = vsel %vm1165_vm0, %v1969_v24, 0.0 }
 0x79d   :  { %1970 = vpow2.f32 %v1625_v58  ;;  %1644 = vadd.xlane.f32.xlu2 %v1643_v4 }
 0x7a0   :  { %v1603_v47 = vpop.xlane.xlu2 %1602 }
 0x7a1   :  { %v1613_v14 = vsub.f32 %v1581_v43, %v1603_v47 }
 0x7a3   :  { %v1971_v7 = vpop.eup %1970  ;;  %v1627_v9 = vmul.f32 1.442695, %v1613_v14 }
 0x7a4   :  { %v1646_v11 = vsel %vm1165_vm0, %v1971_v7, 0.0 }
 0x7a5   :  { %1972 = vpow2.f32 %v1627_v9  ;;  %1647 = vadd.xlane.f32.xlu1 %v1646_v11 }
 0x7ab   :  { %v1973_v20 = vpop.eup %1972 }
 0x7ac   :  { %v1649_v39 = vsel %vm1165_vm0, %v1973_v20, 0.0 }
 0x7ad   :  { %1650 = vadd.xlane.f32.xlu0 %v1649_v39 }
 0x7f1   :  { %v1633_v12 = vpop.xlane.xlu0 %1632 }
 0x7f2   :  { %1974 = vlog2.f32 %v1633_v12 }
 0x7f3   :  { %v1606_v29 = vpop.xlane.xlu1 %1605 }
 0x7f4   :  { %v1614_v51 = vsub.f32 %v1582_v25, %v1606_v29 }
 0x7f6   :  { %v1629_v28 = vmul.f32 1.442695, %v1614_v51 }
 0x7f8   :  { %1976 = vpow2.f32 %v1629_v28  ;;  %v1975_v26 = vpop.eup %1974  ;;  %v1636_v18 = vpop.xlane.xlu2 %1635 }
 0x7f9   :  { %v1656_v55 = vmul.f32 0.6931472, %v1975_v26  ;;  %1978 = vlog2.f32 %v1636_v18 }
 0x7fb   :  { %v1671_v10 = vsub.f32 %v2828_v59, %v1656_v55 }
 0x7fd   :  { %1679 = vst.msk [vmem:[%s2897_s8] sm:$0xff] %vm1165_vm0, %v1671_v10 }
 0x7fe   :  { %v1977_v2 = vpop.eup %1976 }
 0x7ff   :  { %v1652_v13 = vsel %vm1165_vm0, %v1977_v2, 0.0  ;;  %v1979_v42 = vpop.eup %1978 }
 0x800   :  { %1653 = vadd.xlane.f32.xlu2 %v1652_v13  ;;  %v1658_v54 = vmul.f32 0.6931472, %v1979_v42  ;;  %v1639_v40 = vpop.xlane.xlu1 %1638 }
 0x801   :  { %1980 = vlog2.f32 %v1639_v40 }
 0x802   :  { %v1672_v3 = vsub.f32 %v2831_v62, %v1658_v54 }
 0x804   :  { %1680 = vst.msk [vmem:[%s2897_s8 + $0x8] sm:$0xff] %vm1165_vm0, %v1672_v3 }
 0x807   :  { %v1981_v57 = vpop.eup %1980 }
 0x808   :  { %v1660_v31 = vmul.f32 0.6931472, %v1981_v57  ;;  %v1642_v38 = vpop.xlane.xlu0 %1641 }
 0x809   :  { %1982 = vlog2.f32 %v1642_v38 }
 0x80a   :  { %v1673_v21 = vsub.f32 %v2836_v19, %v1660_v31 }
 0x80c   :  { %1681 = vst.msk [vmem:[%s2897_s8 + $0x10] sm:$0xff] %vm1165_vm0, %v1673_v21 }
 0x80f   :  { %v1983_v60 = vpop.eup %1982 }
 0x810   :  { %v1662_v6 = vmul.f32 0.6931472, %v1983_v60  ;;  %v1645_v43 = vpop.xlane.xlu2 %1644 }
 0x811   :  { %1984 = vlog2.f32 %v1645_v43 }
 0x812   :  { %v1674_v0 = vsub.f32 %v2840_v37, %v1662_v6 }
 0x814   :  { %1682 = vst.msk [vmem:[%s2897_s8 + $0x18] sm:$0xff] %vm1165_vm0, %v1674_v0 }
 0x817   :  { %v1985_v15 = vpop.eup %1984 }
 0x818   :  { %v1664_v22 = vmul.f32 0.6931472, %v1985_v15  ;;  %v1648_v16 = vpop.xlane.xlu1 %1647 }
 0x819   :  { %1986 = vlog2.f32 %v1648_v16 }
 0x81a   :  { %v1675_v61 = vsub.f32 %v2844_v17, %v1664_v22 }
 0x81c   :  { %1683 = vst.msk [vmem:[%s2897_s8 + $0x20] sm:$0xff] %vm1165_vm0, %v1675_v61 }
 0x81f   :  { %v1987_v59 = vpop.eup %1986 }
 0x820   :  { %v1666_v44 = vmul.f32 0.6931472, %v1987_v59  ;;  %v1651_v8 = vpop.xlane.xlu0 %1650 }
 0x821   :  { %1988 = vlog2.f32 %v1651_v8 }
 0x822   :  { %v1676_v63 = vsub.f32 %v1612_v56, %v1666_v44 }
 0x824   :  { %1684 = vst.msk [vmem:[%s2897_s8 + $0x28] sm:$0xff] %vm1165_vm0, %v1676_v63 }
 0x827   :  { %v1989_v32 = vpop.eup %1988 }
 0x828   :  { %v1668_v62 = vmul.f32 0.6931472, %v1989_v32 }
 0x82a   :  { %v1677_v23 = vsub.f32 %v1613_v14, %v1668_v62 }
 0x82c   :  { %1685 = vst.msk [vmem:[%s2897_s8 + $0x30] sm:$0xff] %vm1165_vm0, %v1677_v23 }
 0x873   :  { %v1654_v33 = vpop.xlane.xlu2 %1653 }
 0x874   :  { %1990 = vlog2.f32 %v1654_v33 }
 0x87a   :  { %v1991_v25 = vpop.eup %1990 }
 0x87b   :  { %v1670_v27 = vmul.f32 0.6931472, %v1991_v25 }
 0x87d   :  { %v1678_v1 = vsub.f32 %v1614_v51, %v1670_v27 }
 0x87f   :  { %1686 = vst.msk [vmem:[%s2897_s8 + $0x38] sm:$0xff] %vm1165_vm0, %v1678_v1 }

</bundles_post_ra>
